<compile_context>
chip_gen: v7x
topology: tpu7x:2x2x1
jax: 0.10.0
libtpu: 0.0.40
codegen_flags: <defaults>
</compile_context>

<pallas_src>
import jax
import jax.numpy as jnp
from jax.experimental import pallas as pl
from jax.experimental.pallas import tpu as pltpu


# --------------------------------------------------------------------------- kernel
def _fused_node_model_kernel(ts_ref, tc_ref,                      # scalar prefetch (SMEM)
                             row_ref, hin_ref, xw2_ref, inv_cnt_ref,
                             w1a_ref, b1a_ref, w1b_ref, b1b_ref,
                             w2as_ref, w2b_ref, b2b_ref,
                             out_ref, acc_ref):
    i = pl.program_id(0)      # node tile
    j = pl.program_id(1)      # edge tile (relative to this node tile's range)

    @pl.when(j == 0)
    def _init():
        acc_ref[...] = jnp.zeros_like(acc_ref)

    # Only edge tiles that can contain edges for node tile i do any work.
    @pl.when(j < tc_ref[i])
    def _accumulate():
        # ---- node_mlp_1 on this edge tile (fused; no [E, T] HBM round trip) ----
        h1 = jnp.dot(hin_ref[...], w1a_ref[...],
                     preferred_element_type=jnp.float32) + b1a_ref[...]
        h1 = jnp.maximum(h1, 0.0)                                   # ReLU (f32)
        m1 = jnp.dot(h1.astype(jnp.bfloat16), w1b_ref[...],
                     preferred_element_type=jnp.float32) + b1b_ref[...]

        # ---- one-hot scatter-sum on the MXU: [tn, te] @ [te, T_pad] ----
        tn = acc_ref.shape[0]
        node_ids = i * tn + jax.lax.broadcasted_iota(jnp.int32, (tn, 1), 0)
        mask = (row_ref[...] == node_ids).astype(jnp.bfloat16)      # (1,te) vs (tn,1) -> (tn,te)
        acc_ref[...] += jnp.dot(mask, m1.astype(jnp.bfloat16),
                                preferred_element_type=jnp.float32)

    # ---- finalize on the last inner step: mean + node_mlp_2 (x-branch precomputed) ----
    @pl.when(j == pl.num_programs(1) - 1)
    def _finalize():
        scattered = acc_ref[...] * inv_cnt_ref[...]                 # [tn, T_pad] f32
        h2 = xw2_ref[...] + jnp.dot(scattered.astype(jnp.bfloat16), w2as_ref[...],
                                    preferred_element_type=jnp.float32)
        h2 = jnp.maximum(h2, 0.0)                                   # ReLU (f32)
        out = jnp.dot(h2.astype(jnp.bfloat16), w2b_ref[...],
                      preferred_element_type=jnp.float32) + b2b_ref[...]
        out_ref[...] = out.astype(out_ref.dtype)


# --------------------------------------------------------------------------- wrapper
def _round_up(v, m):
    return ((v + m - 1) // m) * m


def node_model_forward(params, x, edge_index, edge_attr, u=None, batch=None,
                       *, edge_tile=2048, node_tile=512,
                       max_edge_tiles_per_node_tile=None):
    """Pallas implementation of NodeModel.forward (u, batch unused, as in the module).

    edge_tile must be a multiple of 128 and node_tile a multiple of 8 (both are clipped to
    the problem size for small graphs).  If `max_edge_tiles_per_node_tile` is None the inner
    grid extent is derived from the data (forces a host sync; pass a static bound such as
    ceil(E_pad/edge_tile) if you need to jit this wrapper).
    """
    n_nodes, n_features = x.shape
    n_edges, n_edge_feat = edge_attr.shape
    hiddens = params["w1a"].shape[1]
    n_targets = params["w1b"].shape[1]
    fin1 = n_features + n_edge_feat

    assert edge_tile % 128 == 0, "edge_tile must be a multiple of 128"
    assert node_tile % 8 == 0, "node_tile must be a multiple of 8"

    # Lane-dense padded hidden / target widths.
    h_pad = _round_up(hiddens, 128)
    t_pad = _round_up(n_targets, 128)

    # Edge tiling (te always 128-aligned; e_pad a multiple of te).
    te = min(edge_tile, _round_up(n_edges, 128))
    e_pad = _round_up(n_edges, te)
    n_et = e_pad // te

    # Node tiling; prefer >= 2 node tiles so both v7x TensorCores get work ("parallel" axis).
    tn = min(node_tile, _round_up(n_nodes, 8))
    if n_nodes > 8 and _round_up(n_nodes, tn) // tn < 2:
        tn = _round_up(_round_up(n_nodes, 8) // 2, 8)
    n_pad = _round_up(n_nodes, tn)
    n_nt = n_pad // tn

    row = edge_index[0].astype(jnp.int32)
    col = edge_index[1].astype(jnp.int32)

    # ------------- JAX-side glue: sort by destination, gather, concat, counts -------------
    order = jnp.argsort(row)
    row_s = row[order]
    col_s = col[order]
    ea_s = edge_attr[order].astype(jnp.bfloat16)
    x_bf = x.astype(jnp.bfloat16)

    hin = jnp.concatenate([x_bf[col_s], ea_s], axis=1)              # [E, F+Fe] bf16
    hin = jnp.pad(hin, ((0, e_pad - n_edges), (0, 0)))
    # Padded edges get row = -1 so they never match a real node id.
    row_p = jnp.full((1, e_pad), -1, jnp.int32).at[0, :n_edges].set(row_s)

    # Per-node 1/count for the mean (count-0 nodes -> divide by 1 -> 0 result).
    cnt = jax.ops.segment_sum(jnp.ones((n_edges,), jnp.float32), row,
                              num_segments=n_nodes)
    inv_cnt = (1.0 / jnp.maximum(cnt, 1.0)).reshape(n_nodes, 1)
    inv_cnt = jnp.pad(inv_cnt, ((0, n_pad - n_nodes), (0, 0)))

    # Per-node-tile edge-tile ranges (edges are row-sorted, so each range is contiguous).
    bounds = jnp.arange(n_nt + 1, dtype=jnp.int32) * tn
    pos = jnp.searchsorted(row_s, bounds, side="left").astype(jnp.int32)
    starts, ends = pos[:-1], pos[1:]
    tile_start = jnp.minimum(starts // te, n_et - 1).astype(jnp.int32)
    tile_count = jnp.where(ends > starts,
                           (ends - 1) // te + 1 - starts // te,
                           0).astype(jnp.int32)

    if max_edge_tiles_per_node_tile is None:
        max_j = max(int(jnp.max(tile_count)), 1)     # data-dependent inner grid extent
    else:
        max_j = max(int(max_edge_tiles_per_node_tile), 1)

    # ------------------------------------ weights ------------------------------------
    def pad_w(w, r, c):  # zero-pad weights to lane-dense widths, bf16 for the MXU
        return jnp.pad(w, ((0, r - w.shape[0]), (0, c - w.shape[1]))).astype(jnp.bfloat16)

    def pad_b(b, c):     # biases stay f32 (added post-accumulation)
        return jnp.pad(b, (0, c - b.shape[0])).reshape(1, c).astype(jnp.float32)

    w1a = pad_w(params["w1a"], fin1, h_pad)
    b1a = pad_b(params["b1a"], h_pad)
    w1b = pad_w(params["w1b"], h_pad, t_pad)
    b1b = pad_b(params["b1b"], t_pad)
    # mlp2 first layer: rows [:F] multiply x (hoisted to XLA below), rows [F:] multiply agg.
    w2as = pad_w(params["w2a"][n_features:, :], t_pad, h_pad)
    w2b = pad_w(params["w2b"], h_pad, t_pad)
    b2b = pad_b(params["b2b"], t_pad)

    # Hoisted x-branch of node_mlp_2 (+ its bias), f32, lane-dense: [n_pad, h_pad].
    x_pad = jnp.pad(x, ((0, n_pad - n_nodes), (0, 0))).astype(jnp.float32)
    w2ax = jnp.pad(params["w2a"][:n_features, :],
                   ((0, 0), (0, h_pad - hiddens))).astype(jnp.float32)
    xw2 = (x_pad @ w2ax + pad_b(params["b2a"], h_pad)).astype(jnp.float32)

    # ------------------------------------ pallas_call ------------------------------------
    def _edge_tile_index(i, j, ts, tc):
        # Clamp skipped steps (j >= count) to the last valid tile so the DMA is a revisit
        # (no re-copy); clamp to the padded extent for empty node tiles.
        jj = jnp.minimum(j, jnp.maximum(tc[i] - 1, 0))
        return jnp.minimum(ts[i] + jj, n_et - 1)

    def _row_map(i, j, ts, tc):
        return (0, _edge_tile_index(i, j, ts, tc))

    def _hin_map(i, j, ts, tc):
        return (_edge_tile_index(i, j, ts, tc), 0)

    active_steps = n_nt * max_j     # upper bound on compute steps (real = sum(tile_count))
    cost = pl.CostEstimate(
        flops=int(active_steps * (2 * te * fin1 * h_pad
                                  + 2 * te * h_pad * t_pad
                                  + 2 * tn * te * t_pad)
                  + n_nt * (2 * tn * t_pad * h_pad + 2 * tn * h_pad * t_pad)),
        transcendentals=0,
        bytes_accessed=int(active_steps * (te * fin1 * 2 + te * 4)
                           + n_nt * (tn * h_pad * 4 + tn * 4 + tn * t_pad * 4)
                           + (w1a.size + w1b.size + w2as.size + w2b.size) * 2
                           + (b1a.size + b1b.size + b2b.size) * 4))

    # NOTE: weight/bias specs have constant index_maps -> fetched once (revisit-skipped),
    # and kernel-2 output stays f32 (t_pad padding makes the store 4x wider than n_targets;
    # small vs the edge stream, so kept f32 for accuracy).
    grid_spec = pltpu.PrefetchScalarGridSpec(
        num_scalar_prefetch=2,
        grid=(n_nt, max_j),
        in_specs=[
            pl.BlockSpec((1, te), _row_map),                            # sorted row ids
            pl.BlockSpec((te, fin1), _hin_map),                         # cat([x[col], e_attr])
            pl.BlockSpec((tn, h_pad), lambda i, j, ts, tc: (i, 0)),     # xw2 node tile
            pl.BlockSpec((tn, 1), lambda i, j, ts, tc: (i, 0)),         # 1/count node tile
            pl.BlockSpec((fin1, h_pad), lambda i, j, ts, tc: (0, 0)),   # w1a
            pl.BlockSpec((1, h_pad), lambda i, j, ts, tc: (0, 0)),      # b1a
            pl.BlockSpec((h_pad, t_pad), lambda i, j, ts, tc: (0, 0)),  # w1b
            pl.BlockSpec((1, t_pad), lambda i, j, ts, tc: (0, 0)),      # b1b
            pl.BlockSpec((t_pad, h_pad), lambda i, j, ts, tc: (0, 0)),  # w2a (agg rows)
            pl.BlockSpec((h_pad, t_pad), lambda i, j, ts, tc: (0, 0)),  # w2b
            pl.BlockSpec((1, t_pad), lambda i, j, ts, tc: (0, 0)),      # b2b
        ],
        out_specs=pl.BlockSpec((tn, t_pad), lambda i, j, ts, tc: (i, 0)),
        scratch_shapes=[pltpu.VMEM((tn, t_pad), jnp.float32)],
    )

    out = pl.pallas_call(
        _fused_node_model_kernel,
        out_shape=jax.ShapeDtypeStruct((n_pad, t_pad), jnp.float32),
        grid_spec=grid_spec,
        compiler_params=pltpu.CompilerParams(
            dimension_semantics=("parallel", "arbitrary"),
            vmem_limit_bytes=32 * 1024 * 1024),
        cost_estimate=cost,
    )(tile_start, tile_count, row_p, hin, xw2, inv_cnt,
      w1a, b1a, w1b, b1b, w2as, w2b, b2b)

    return out[:n_nodes, :n_targets]


# --------------------------------------------------------------------------- reference
def node_model_reference(params, x, edge_index, edge_attr):
    """Pure-JAX f32 reference matching the PyTorch forward."""
    row, col = edge_index[0], edge_index[1]
    n_nodes = x.shape[0]
    out = jnp.concatenate([x[col], edge_attr], axis=1)
    out = jnp.maximum(out @ params["w1a"] + params["b1a"], 0.0)
    out = out @ params["w1b"] + params["b1b"]
    ssum = jax.ops.segment_sum(out, row, num_segments=n_nodes)
    cnt = jax.ops.segment_sum(jnp.ones((row.shape[0],), jnp.float32), row,
                              num_segments=n_nodes)
    out = ssum / jnp.maximum(cnt, 1.0)[:, None]
    out = jnp.concatenate([x, out], axis=1)
    out = jnp.maximum(out @ params["w2a"] + params["b2a"], 0.0)
    return out @ params["w2b"] + params["b2b"]


def init_params(key, n_features, n_edge_features, hiddens, n_targets):
    ks = jax.random.split(key, 8)

    def lin(k, fan_in, fan_out):
        scale = 1.0 / jnp.sqrt(fan_in)
        return jax.random.uniform(k, (fan_in, fan_out), jnp.float32, -scale, scale)

    return {
        "w1a": lin(ks[0], n_features + n_edge_features, hiddens),
        "b1a": jax.random.uniform(ks[1], (hiddens,), jnp.float32, -0.1, 0.1),
        "w1b": lin(ks[2], hiddens, n_targets),
        "b1b": jax.random.uniform(ks[3], (n_targets,), jnp.float32, -0.1, 0.1),
        "w2a": lin(ks[4], hiddens + n_features, hiddens),
        "b2a": jax.random.uniform(ks[5], (hiddens,), jnp.float32, -0.1, 0.1),
        "w2b": lin(ks[6], hiddens, n_targets),
        "b2b": jax.random.uniform(ks[7], (n_targets,), jnp.float32, -0.1, 0.1),
    }


if __name__ == "__main__":
    # NOTE: the module's forward only typechecks when n_targets == hiddens
    # (mlp2 expects hiddens + n_features inputs but receives n_features + n_targets).
    n_features, n_edge_features = 8, 8
    hiddens = n_targets = 32

    key = jax.random.PRNGKey(0)
    kp, kx, ke, ki, ku = jax.random.split(key, 5)
    params = init_params(kp, n_features, n_edge_features, hiddens, n_targets)

    # -- case 1: small graph (default tiles; node axis auto-split into 2 tiles) --
    n_nodes, n_edges = 16, 32
    x = jax.random.normal(kx, (n_nodes, n_features), jnp.float32)
    edge_attr = jax.random.normal(ke, (n_edges, n_edge_features), jnp.float32)
    edge_index = jax.random.randint(ki, (2, n_edges), 0, n_nodes, jnp.int32)
    u = jax.random.normal(ku, (1, 4), jnp.float32)      # unused by forward
    batch = jnp.zeros((n_nodes,), jnp.int32)            # unused by forward

    out = jax.block_until_ready(
        node_model_forward(params, x, edge_index, edge_attr, u, batch))
    ref = node_model_reference(params, x, edge_index, edge_attr)
    assert out.shape == (n_nodes, n_targets)
    assert jnp.allclose(out, ref, rtol=2e-2, atol=2e-2), "case 1 mismatch vs reference"

    # -- case 2: multi-tile grid with a STATIC inner-extent bound (exercises the
    #    range-restricted index_map clamping and the pl.when skip guard) --
    n_nodes2, n_edges2 = 40, 300
    kx2, ke2, ki2 = jax.random.split(jax.random.PRNGKey(1), 3)
    x2 = jax.random.normal(kx2, (n_nodes2, n_features), jnp.float32)
    ea2 = jax.random.normal(ke2, (n_edges2, n_edge_features), jnp.float32)
    ei2 = jax.random.randint(ki2, (2, n_edges2), 0, n_nodes2, jnp.int32)
    out2 = jax.block_until_ready(
        node_model_forward(params, x2, ei2, ea2, None, None,
                           edge_tile=128, node_tile=8,
                           max_edge_tiles_per_node_tile=3))   # = total edge tiles (safe bound)
    ref2 = node_model_reference(params, x2, ei2, ea2)
    assert out2.shape == (n_nodes2, n_targets)
    assert jnp.allclose(out2, ref2, rtol=2e-2, atol=2e-2), "case 2 mismatch vs reference"

    # -- case 3: larger graph with default tiles (multiple node AND edge tiles;
    #    data-derived inner grid extent, sorted ranges actually restrict work) --
    n_nodes3, n_edges3 = 600, 3000
    kx3, ke3, ki3 = jax.random.split(jax.random.PRNGKey(2), 3)
    x3 = jax.random.normal(kx3, (n_nodes3, n_features), jnp.float32)
    ea3 = jax.random.normal(ke3, (n_edges3, n_edge_features), jnp.float32)
    ei3 = jax.random.randint(ki3, (2, n_edges3), 0, n_nodes3, jnp.int32)
    out3 = jax.block_until_ready(node_model_forward(params, x3, ei3, ea3))
    ref3 = node_model_reference(params, x3, ei3, ea3)
    assert out3.shape == (n_nodes3, n_targets)
    assert jnp.allclose(out3, ref3, rtol=2e-2, atol=2e-2), "case 3 mismatch vs reference"

    print("KERNEL_OK")
</pallas_src>

<mosaic_0001>
module attributes {stable_mosaic.version = 11 : i64} {
  func.func @_fused_node_model_kernel(%arg0: i32, %arg1: i32, %arg2: memref<2xi32, #tpu.memory_space<smem>>, %arg3: memref<2xi32, #tpu.memory_space<smem>>, %arg4: memref<1x128xi32, #tpu.memory_space<vmem>>, %arg5: memref<128x16xbf16, #tpu.memory_space<vmem>>, %arg6: memref<8x128xf32, #tpu.memory_space<vmem>>, %arg7: memref<8x1xf32, #tpu.memory_space<vmem>>, %arg8: memref<16x128xbf16, #tpu.memory_space<vmem>>, %arg9: memref<1x128xf32, #tpu.memory_space<vmem>>, %arg10: memref<128x128xbf16, #tpu.memory_space<vmem>>, %arg11: memref<1x128xf32, #tpu.memory_space<vmem>>, %arg12: memref<128x128xbf16, #tpu.memory_space<vmem>>, %arg13: memref<128x128xbf16, #tpu.memory_space<vmem>>, %arg14: memref<1x128xf32, #tpu.memory_space<vmem>>, %arg15: memref<8x128xf32, #tpu.memory_space<vmem>>, %arg16: memref<8x128xf32, #tpu.memory_space<vmem>>) attributes {dimension_semantics = [#tpu.dimension_semantics<parallel>, #tpu.dimension_semantics<arbitrary>], iteration_bounds = array<i64: 2, 1>, scalar_prefetch = 2 : i64, scratch_operands = 1 : i64, tpu.core_type = #tpu.core_type<tc>, window_params = [{transform_indices = @transform_0, window_bounds = array<i64: 1, 128>}, {transform_indices = @transform_1, window_bounds = array<i64: 128, 16>}, {transform_indices = @transform_2, window_bounds = array<i64: 8, 128>}, {transform_indices = @transform_3, window_bounds = array<i64: 8, 1>}, {pipeline_mode = #tpu.pipeline_mode<synchronous>, transform_indices = @transform_4, window_bounds = array<i64: 16, 128>}, {pipeline_mode = #tpu.pipeline_mode<synchronous>, transform_indices = @transform_5, window_bounds = array<i64: 1, 128>}, {pipeline_mode = #tpu.pipeline_mode<synchronous>, transform_indices = @transform_6, window_bounds = array<i64: 128, 128>}, {pipeline_mode = #tpu.pipeline_mode<synchronous>, transform_indices = @transform_7, window_bounds = array<i64: 1, 128>}, {pipeline_mode = #tpu.pipeline_mode<synchronous>, transform_indices = @transform_8, window_bounds = array<i64: 128, 128>}, {pipeline_mode = #tpu.pipeline_mode<synchronous>, transform_indices = @transform_9, window_bounds = array<i64: 128, 128>}, {pipeline_mode = #tpu.pipeline_mode<synchronous>, transform_indices = @transform_10, window_bounds = array<i64: 1, 128>}, {transform_indices = @transform_11, window_bounds = array<i64: 8, 128>}]} {
    %c0_i32 = arith.constant 0 : i32
    %0 = arith.cmpi eq, %arg1, %c0_i32 : i32
    %1 = arith.extui %0 : i1 to i32
    %c0_i32_0 = arith.constant 0 : i32
    %2 = arith.cmpi ne, %1, %c0_i32_0 : i32
    scf.if %2 {
      %cst = arith.constant 0.000000e+00 : f32
      %11 = vector.broadcast %cst : f32 to vector<8x128xf32>
      %c0 = arith.constant 0 : index
      %c0_4 = arith.constant 0 : index
      %12 = vector.load %arg16[%c0, %c0_4] : memref<8x128xf32, #tpu.memory_space<vmem>>, vector<8x128xf32>
      tpu.vector_store %arg16[%c0, %c0_4], %11 {strides = array<i32>} : memref<8x128xf32, #tpu.memory_space<vmem>>, vector<8x128xf32>,
    } else {
    }
    %3 = arith.index_cast %arg0 : i32 to index
    %4 = memref.load %arg3[%3] : memref<2xi32, #tpu.memory_space<smem>>
    %5 = arith.cmpi slt, %arg1, %4 : i32
    %6 = arith.extui %5 : i1 to i32
    %c0_i32_1 = arith.constant 0 : i32
    %7 = arith.cmpi ne, %6, %c0_i32_1 : i32
    scf.if %7 {
      %c0 = arith.constant 0 : index
      %c0_4 = arith.constant 0 : index
      %11 = vector.load %arg5[%c0, %c0_4] : memref<128x16xbf16, #tpu.memory_space<vmem>>, vector<128x16xbf16>
      %c0_5 = arith.constant 0 : index
      %c0_6 = arith.constant 0 : index
      %12 = vector.load %arg8[%c0_5, %c0_6] : memref<16x128xbf16, #tpu.memory_space<vmem>>, vector<16x128xbf16>
      %cst = arith.constant dense<0.000000e+00> : vector<128x128xf32>
      %13 = tpu.matmul %11, %12, %cst {dimension_numbers = #tpu.dot_dimension_numbers<[1], [0], [0], [1], [0, 0, 1, 1], [], []>} : vector<128x16xbf16>, vector<16x128xbf16>, vector<128x128xf32> -> vector<128x128xf32>
      %c0_7 = arith.constant 0 : index
      %c0_8 = arith.constant 0 : index
      %14 = vector.load %arg9[%c0_7, %c0_8] : memref<1x128xf32, #tpu.memory_space<vmem>>, vector<1x128xf32>
      %15 = vector.broadcast %14 : vector<1x128xf32> to vector<128x128xf32>
      %16 = arith.addf %13, %15 : vector<128x128xf32>
      %cst_9 = arith.constant 0.000000e+00 : f32
      %17 = vector.broadcast %cst_9 : f32 to vector<128x128xf32>
      %18 = arith.maximumf %16, %17 : vector<128x128xf32>
      %19 = arith.truncf %18 : vector<128x128xf32> to vector<128x128xbf16>
      %c0_10 = arith.constant 0 : index
      %c0_11 = arith.constant 0 : index
      %20 = vector.load %arg10[%c0_10, %c0_11] : memref<128x128xbf16, #tpu.memory_space<vmem>>, vector<128x128xbf16>
      %cst_12 = arith.constant dense<0.000000e+00> : vector<128x128xf32>
      %21 = tpu.matmul %19, %20, %cst_12 {dimension_numbers = #tpu.dot_dimension_numbers<[1], [0], [0], [1], [0, 0, 1, 1], [], []>} : vector<128x128xbf16>, vector<128x128xbf16>, vector<128x128xf32> -> vector<128x128xf32>
      %c0_13 = arith.constant 0 : index
      %c0_14 = arith.constant 0 : index
      %22 = vector.load %arg11[%c0_13, %c0_14] : memref<1x128xf32, #tpu.memory_space<vmem>>, vector<1x128xf32>
      %23 = vector.broadcast %22 : vector<1x128xf32> to vector<128x128xf32>
      %24 = arith.addf %21, %23 : vector<128x128xf32>
      %c8_i32 = arith.constant 8 : i32
      %25 = arith.muli %arg0, %c8_i32 : i32
      %26 = tpu.iota {dimensions = array<i32: 0>} : vector<8x1xi32>
      %27 = vector.broadcast %25 : i32 to vector<8x1xi32>
      %28 = arith.addi %27, %26 : vector<8x1xi32>
      %c0_15 = arith.constant 0 : index
      %c0_16 = arith.constant 0 : index
      %29 = vector.load %arg4[%c0_15, %c0_16] : memref<1x128xi32, #tpu.memory_space<vmem>>, vector<1x128xi32>
      %30 = vector.broadcast %29 : vector<1x128xi32> to vector<8x128xi32>
      %31 = vector.broadcast %28 : vector<8x1xi32> to vector<8x128xi32>
      %32 = arith.cmpi eq, %30, %31 : vector<8x128xi32>
      %33 = arith.extui %32 : vector<8x128xi1> to vector<8x128xi32>
      %34 = arith.sitofp %33 : vector<8x128xi32> to vector<8x128xf32>
      %35 = arith.truncf %34 : vector<8x128xf32> to vector<8x128xbf16>
      %c0_17 = arith.constant 0 : index
      %c0_18 = arith.constant 0 : index
      %36 = vector.load %arg16[%c0_17, %c0_18] : memref<8x128xf32, #tpu.memory_space<vmem>>, vector<8x128xf32>
      %37 = arith.truncf %24 : vector<128x128xf32> to vector<128x128xbf16>
      %cst_19 = arith.constant dense<0.000000e+00> : vector<8x128xf32>
      %38 = tpu.matmul %35, %37, %cst_19 {dimension_numbers = #tpu.dot_dimension_numbers<[1], [0], [0], [1], [0, 0, 1, 1], [], []>} : vector<8x128xbf16>, vector<128x128xbf16>, vector<8x128xf32> -> vector<8x128xf32>
      %39 = arith.addf %36, %38 : vector<8x128xf32>
      %c0_20 = arith.constant 0 : index
      %c0_21 = arith.constant 0 : index
      %40 = vector.load %arg16[%c0_20, %c0_21] : memref<8x128xf32, #tpu.memory_space<vmem>>, vector<8x128xf32>
      tpu.vector_store %arg16[%c0_20, %c0_21], %39 {strides = array<i32>} : memref<8x128xf32, #tpu.memory_space<vmem>>, vector<8x128xf32>,
    } else {
    }
    %c0_i32_2 = arith.constant 0 : i32
    %8 = arith.cmpi eq, %arg1, %c0_i32_2 : i32
    %9 = arith.extui %8 : i1 to i32
    %c0_i32_3 = arith.constant 0 : i32
    %10 = arith.cmpi ne, %9, %c0_i32_3 : i32
    scf.if %10 {
      %c0 = arith.constant 0 : index
      %c0_4 = arith.constant 0 : index
      %11 = vector.load %arg16[%c0, %c0_4] : memref<8x128xf32, #tpu.memory_space<vmem>>, vector<8x128xf32>
      %c0_5 = arith.constant 0 : index
      %c0_6 = arith.constant 0 : index
      %12 = vector.load %arg7[%c0_5, %c0_6] : memref<8x1xf32, #tpu.memory_space<vmem>>, vector<8x1xf32>
      %13 = vector.broadcast %12 : vector<8x1xf32> to vector<8x128xf32>
      %14 = arith.mulf %11, %13 : vector<8x128xf32>
      %c0_7 = arith.constant 0 : index
      %c0_8 = arith.constant 0 : index
      %15 = vector.load %arg6[%c0_7, %c0_8] : memref<8x128xf32, #tpu.memory_space<vmem>>, vector<8x128xf32>
      %16 = arith.truncf %14 : vector<8x128xf32> to vector<8x128xbf16>
      %c0_9 = arith.constant 0 : index
      %c0_10 = arith.constant 0 : index
      %17 = vector.load %arg12[%c0_9, %c0_10] : memref<128x128xbf16, #tpu.memory_space<vmem>>, vector<128x128xbf16>
      %cst = arith.constant dense<0.000000e+00> : vector<8x128xf32>
      %18 = tpu.matmul %16, %17, %cst {dimension_numbers = #tpu.dot_dimension_numbers<[1], [0], [0], [1], [0, 0, 1, 1], [], []>} : vector<8x128xbf16>, vector<128x128xbf16>, vector<8x128xf32> -> vector<8x128xf32>
      %19 = arith.addf %15, %18 : vector<8x128xf32>
      %cst_11 = arith.constant 0.000000e+00 : f32
      %20 = vector.broadcast %cst_11 : f32 to vector<8x128xf32>
      %21 = arith.maximumf %19, %20 : vector<8x128xf32>
      %22 = arith.truncf %21 : vector<8x128xf32> to vector<8x128xbf16>
      %c0_12 = arith.constant 0 : index
      %c0_13 = arith.constant 0 : index
      %23 = vector.load %arg13[%c0_12, %c0_13] : memref<128x128xbf16, #tpu.memory_space<vmem>>, vector<128x128xbf16>
      %cst_14 = arith.constant dense<0.000000e+00> : vector<8x128xf32>
      %24 = tpu.matmul %22, %23, %cst_14 {dimension_numbers = #tpu.dot_dimension_numbers<[1], [0], [0], [1], [0, 0, 1, 1], [], []>} : vector<8x128xbf16>, vector<128x128xbf16>, vector<8x128xf32> -> vector<8x128xf32>
      %c0_15 = arith.constant 0 : index
      %c0_16 = arith.constant 0 : index
      %25 = vector.load %arg14[%c0_15, %c0_16] : memref<1x128xf32, #tpu.memory_space<vmem>>, vector<1x128xf32>
      %26 = vector.broadcast %25 : vector<1x128xf32> to vector<8x128xf32>
      %27 = arith.addf %24, %26 : vector<8x128xf32>
      %c0_17 = arith.constant 0 : index
      %c0_18 = arith.constant 0 : index
      %28 = vector.load %arg15[%c0_17, %c0_18] : memref<8x128xf32, #tpu.memory_space<vmem>>, vector<8x128xf32>
      tpu.vector_store %arg15[%c0_17, %c0_18], %27 {strides = array<i32>} : memref<8x128xf32, #tpu.memory_space<vmem>>, vector<8x128xf32>,
    } else {
    }
    return
  }
  func.func @transform_0(%arg0: i32, %arg1: i32, %arg2: memref<2xi32, #tpu.memory_space<smem>>, %arg3: memref<2xi32, #tpu.memory_space<smem>>) -> (i32, i32) {
    %0 = arith.index_cast %arg0 : i32 to index
    %1 = memref.load %arg3[%0] : memref<2xi32, #tpu.memory_space<smem>>
    %c1_i32 = arith.constant 1 : i32
    %2 = arith.subi %1, %c1_i32 : i32
    %c0_i32 = arith.constant 0 : i32
    %3 = arith.maxsi %2, %c0_i32 : i32
    %4 = arith.minsi %arg1, %3 : i32
    %5 = arith.index_cast %arg0 : i32 to index
    %6 = memref.load %arg2[%5] : memref<2xi32, #tpu.memory_space<smem>>
    %7 = arith.addi %6, %4 : i32
    %c0_i32_0 = arith.constant 0 : i32
    %8 = arith.minsi %7, %c0_i32_0 : i32
    %c0_i32_1 = arith.constant 0 : i32
    %c0_i32_2 = arith.constant 0 : i32
    return %c0_i32_1, %8 : i32, i32
  }
  func.func @transform_1(%arg0: i32, %arg1: i32, %arg2: memref<2xi32, #tpu.memory_space<smem>>, %arg3: memref<2xi32, #tpu.memory_space<smem>>) -> (i32, i32) {
    %0 = arith.index_cast %arg0 : i32 to index
    %1 = memref.load %arg3[%0] : memref<2xi32, #tpu.memory_space<smem>>
    %c1_i32 = arith.constant 1 : i32
    %2 = arith.subi %1, %c1_i32 : i32
    %c0_i32 = arith.constant 0 : i32
    %3 = arith.maxsi %2, %c0_i32 : i32
    %4 = arith.minsi %arg1, %3 : i32
    %5 = arith.index_cast %arg0 : i32 to index
    %6 = memref.load %arg2[%5] : memref<2xi32, #tpu.memory_space<smem>>
    %7 = arith.addi %6, %4 : i32
    %c0_i32_0 = arith.constant 0 : i32
    %8 = arith.minsi %7, %c0_i32_0 : i32
    %c0_i32_1 = arith.constant 0 : i32
    %c0_i32_2 = arith.constant 0 : i32
    return %8, %c0_i32_1 : i32, i32
  }
  func.func @transform_2(%arg0: i32, %arg1: i32, %arg2: memref<2xi32, #tpu.memory_space<smem>>, %arg3: memref<2xi32, #tpu.memory_space<smem>>) -> (i32, i32) {
    %c0_i32 = arith.constant 0 : i32
    %c0_i32_0 = arith.constant 0 : i32
    return %arg0, %c0_i32 : i32, i32
  }
  func.func @transform_3(%arg0: i32, %arg1: i32, %arg2: memref<2xi32, #tpu.memory_space<smem>>, %arg3: memref<2xi32, #tpu.memory_space<smem>>) -> (i32, i32) {
    %c0_i32 = arith.constant 0 : i32
    %c0_i32_0 = arith.constant 0 : i32
    return %arg0, %c0_i32 : i32, i32
  }
  func.func @transform_4(%arg0: i32, %arg1: i32, %arg2: memref<2xi32, #tpu.memory_space<smem>>, %arg3: memref<2xi32, #tpu.memory_space<smem>>) -> (i32, i32) {
    %c0_i32 = arith.constant 0 : i32
    %c0_i32_0 = arith.constant 0 : i32
    %c0_i32_1 = arith.constant 0 : i32
    return %c0_i32, %c0_i32_0 : i32, i32
  }
  func.func @transform_5(%arg0: i32, %arg1: i32, %arg2: memref<2xi32, #tpu.memory_space<smem>>, %arg3: memref<2xi32, #tpu.memory_space<smem>>) -> (i32, i32) {
    %c0_i32 = arith.constant 0 : i32
    %c0_i32_0 = arith.constant 0 : i32
    %c0_i32_1 = arith.constant 0 : i32
    return %c0_i32, %c0_i32_0 : i32, i32
  }
  func.func @transform_6(%arg0: i32, %arg1: i32, %arg2: memref<2xi32, #tpu.memory_space<smem>>, %arg3: memref<2xi32, #tpu.memory_space<smem>>) -> (i32, i32) {
    %c0_i32 = arith.constant 0 : i32
    %c0_i32_0 = arith.constant 0 : i32
    %c0_i32_1 = arith.constant 0 : i32
    return %c0_i32, %c0_i32_0 : i32, i32
  }
  func.func @transform_7(%arg0: i32, %arg1: i32, %arg2: memref<2xi32, #tpu.memory_space<smem>>, %arg3: memref<2xi32, #tpu.memory_space<smem>>) -> (i32, i32) {
    %c0_i32 = arith.constant 0 : i32
    %c0_i32_0 = arith.constant 0 : i32
    %c0_i32_1 = arith.constant 0 : i32
    return %c0_i32, %c0_i32_0 : i32, i32
  }
  func.func @transform_8(%arg0: i32, %arg1: i32, %arg2: memref<2xi32, #tpu.memory_space<smem>>, %arg3: memref<2xi32, #tpu.memory_space<smem>>) -> (i32, i32) {
    %c0_i32 = arith.constant 0 : i32
    %c0_i32_0 = arith.constant 0 : i32
    %c0_i32_1 = arith.constant 0 : i32
    return %c0_i32, %c0_i32_0 : i32, i32
  }
  func.func @transform_9(%arg0: i32, %arg1: i32, %arg2: memref<2xi32, #tpu.memory_space<smem>>, %arg3: memref<2xi32, #tpu.memory_space<smem>>) -> (i32, i32) {
    %c0_i32 = arith.constant 0 : i32
    %c0_i32_0 = arith.constant 0 : i32
    %c0_i32_1 = arith.constant 0 : i32
    return %c0_i32, %c0_i32_0 : i32, i32
  }
  func.func @transform_10(%arg0: i32, %arg1: i32, %arg2: memref<2xi32, #tpu.memory_space<smem>>, %arg3: memref<2xi32, #tpu.memory_space<smem>>) -> (i32, i32) {
    %c0_i32 = arith.constant 0 : i32
    %c0_i32_0 = arith.constant 0 : i32
    %c0_i32_1 = arith.constant 0 : i32
    return %c0_i32, %c0_i32_0 : i32, i32
  }
  func.func @transform_11(%arg0: i32, %arg1: i32, %arg2: memref<2xi32, #tpu.memory_space<smem>>, %arg3: memref<2xi32, #tpu.memory_space<smem>>) -> (i32, i32) {
    %c0_i32 = arith.constant 0 : i32
    %c0_i32_0 = arith.constant 0 : i32
    return %arg0, %c0_i32 : i32, i32
  }
}

</mosaic_0001>

<bundles_post_ra>
// kernel: tpu_custom_call.1
= control target key start
LH: loop header
LB: loop body
LE: loop exit
PB: predicated region body
PF: predicated region fallthrough
CT: control target
= control target key end

     0   :  { %s2947_s0 = inlined_call_operand.vmem [shape: s32[2], index: 0, kind: input, shape index: {}]   ;;  %s2948_s2 = inlined_call_operand.hbm [shape: s32[1,128], index: 2, kind: input, shape index: {}]   ;;  %s2949_s3 = inlined_call_operand.vmem [shape: bf16[128,16], index: 3, kind: input, shape index: {}]   ;;  %s2950_s4 = inlined_call_operand.hbm [shape: f32[16,128], index: 4, kind: input, shape index: {}]   ;;  %s2951_s5 = inlined_call_operand.vmem [shape: f32[16,1], index: 5, kind: input, shape index: {}]   ;;  %s2952_s6 = inlined_call_operand.hbm [shape: bf16[16,128], index: 6, kind: input, shape index: {}]   ;;  %s2953_s7 = inlined_call_operand.hbm [shape: f32[1,128], index: 7, kind: input, shape index: {}]   ;;  %s2954_s8 = inlined_call_operand.vmem [shape: bf16[128,128], index: 8, kind: input, shape index: {}]   ;;  %s2955_s9 = inlined_call_operand.hbm [shape: f32[1,128], index: 9, kind: input, shape index: {}]   ;;  %s2956_s10 = inlined_call_operand.hbm [shape: bf16[128,128], index: 10, kind: input, shape index: {}]   ;;  %s2957_s11 = inlined_call_operand.vmem [shape: bf16[128,128], index: 11, kind: input, shape index: {}]   ;;  %s2958_s12 = inlined_call_operand.vmem [shape: f32[1,128], index: 12, kind: input, shape index: {}]   ;;  %s2959_s13 = inlined_call_operand.hbm [shape: f32[16,128], index: 13, kind: output, shape index: {}]   ;;  %s2960_s1 = inlined_call_operand.vmem [shape: s32[2], index: 1, kind: input, shape index: {}]  }
   0x1   :  { %2974 = sst [smem:[#allocation31_spill]] %s2948_s2  ;;  %s18_s27 = sshll.u32 %s2947_s0, 4  ;;  %s19_s27 = int_to_ptr.vmem [resolvable:$true] %s18_s27 }
   0x2   :  { %2975 = sst [smem:[#allocation32_spill]] %s2949_s3  ;;  %s22_s30 = sshll.u32 %s2960_s1, 4  ;;  %s23_s30 = int_to_ptr.vmem [resolvable:$true] %s22_s30 }
   0x3   :  { %2976 = sst [smem:[#allocation33_spill]] %s2950_s4  ;;  %s1982_s14 = scalar_lea.vmem %s19_s27, 16 }
   0x4   :  { %2977 = sst [smem:[#allocation34_spill]] %s2951_s5  ;;  %p1983_p0 = scmp.ne.s32.totalorder %s19_s27, %s1982_s14 }
   0x5   :  { %2978 = sst [smem:[#allocation35_spill]] %s2952_s6  ;;  %p1987_p1 = scmp.lt.s32.totalorder %s19_s27, %s19_s27 }
   0x6   :  { %2979 = sst [smem:[#allocation36_spill]] %s2953_s7  ;;  %p1988_p2 = scmp.lt.s32.totalorder %s1982_s14, %s1982_s14 }
   0x7   :  { %2980 = sst [smem:[#allocation37_spill]] %s2954_s8 }
   0x8   :  { %2981 = sst [smem:[#allocation38_spill]] %s2955_s9  ;;  %p1989_p3 = por %p1988_p2, %p1987_p1 }
   0x9   :  { %2982 = sst [smem:[#allocation39_spill]] %s2956_s10 }
   0xa   :  { %2983 = sst [smem:[#allocation40_spill]] %s2957_s11  ;;  %p1990_p4 = pnand %p1989_p3, %p1983_p0 }
   0xb   :  { %2984 = sst [smem:[#allocation41_spill]] %s2958_s12 }
   0xc   :  { %2985 = sst [smem:[#allocation42_spill]] %s2959_s13 }
   0xd   :  { %1993 = shalt.err (!%p1990_p4)  }
   0xe   :  { %s2304_s15 = smov [#allocation4]   ;;  %s1994_s16 = scalar_lea.vmem %s23_s30, 16 }
   0xf   :  { %21 = dma.vmem_to_smem %s19_s27, 16, %s2304_s15, [#allocation3] }
  0x10   :  { %p1995_p5 = scmp.ne.s32.totalorder %s23_s30, %s1994_s16  ;;  %p1999_p6 = scmp.lt.s32.totalorder %s23_s30, %s23_s30 }
  0x11   :  { %p2000_p7 = scmp.lt.s32.totalorder %s1994_s16, %s1994_s16 }
  0x13   :  { %p2001_p8 = por %p2000_p7, %p1999_p6 }
  0x15   :  { %p2002_p9 = pnand %p2001_p8, %p1995_p5 }
  0x17   :  { %2005 = shalt.err (!%p2002_p9)  }
  0x18   :  { %s2305_s0 = smov [#allocation5]  }
  0x19   :  { %25 = dma.vmem_to_smem %s23_s30, 16, %s2305_s0, [#allocation3] }
  0x1a   :  { %2242 = dma.done.wait [#allocation3], 32 }
  0x1b   :  { %2243 = vsyncadd [#allocation3], 4294967264 }
  0x1c   :  { %27 = sfence }
  0x1d   :  { %28 = vsyncpa [#allocation7], 0 }
  0x1e   :  { %30 = vsyncpa [#allocation7 + $0x1], 0 }
  0x1f   :  { %31 = vsyncpa [#allocation10], 0 }
  0x20   :  { %33 = vsyncpa [#allocation10 + $0x1], 0 }
  0x21   :  { %34 = vsyncpa [#allocation13], 0 }
  0x22   :  { %35 = vsyncpa [#allocation16], 0 }
  0x23   :  { %36 = vsyncpa [#allocation8], 0 }
  0x24   :  { %38 = vsyncpa [#allocation8 + $0x1], 0  ;;  %s2397_s1 = smov 0   ;;  %s2399_s17 = smov 0  }
  0x25   :  { %s2401_s18 = smov 0   ;;  %s2403_s19 = smov 0  }
  0x26   :  { %s2405_s20 = smov 0   ;;  %s2407_s21 = smov 0  }
  0x27   :  { %s2409_s22 = smov 0   ;;  %s2411_s23 = smov 0  }
  0x28   :  { %s2413_s24 = smov 0  }
  0x29 LB: > { %2986 = sst [smem:[#allocation29_spill]] %s2294_s22  ;;  %s2443_s25 = sadd.s32 4294967295, %s2302_s24   ;;  %s2302_s24 = sphi %s2413_s24, %s44_s24   ;;  %s2298_s23 = sphi %s2411_s23, %s3040_s23   ;;  %s2294_s22 = sphi %s2409_s22, %s3039_s22   ;;  %s2290_s21 = sphi %s2407_s21, %s3038_s21   ;;  %s2286_s20 = sphi %s2405_s20, %s3037_s20   ;;  %s2282_s19 = sphi %s2403_s19, %s3036_s19   ;;  %s2278_s18 = sphi %s2401_s18, %s3035_s18   ;;  %s2274_s17 = sphi %s2399_s17, %s3034_s17   ;;  %s2270_s1 = sphi %s2397_s1, %s3033_s1  }
  0x2a   : > { %p1540_p10 = scmp.ge.s32.totalorder %s2302_s24, 1  ;;  %p2966_p11 = scmp.eq.s32.totalorder %s2443_s25, 0 }
  0x2b   : > { %p378_p12 = scmp.lt.s32.totalorder %s2302_s24, 3  ;;  %s2306_s27 = smov [#allocation11]  }
  0x2c   : > { %s390_s28 = sshll.u32 %s2306_s27, 4  ;;  %s2307_s30 = smov [#allocation12]   ;;  %s2452_s28 = int_to_ptr.vmem [resolvable:$true] %s390_s28 }
  0x2d   : > { %p2448_p13 = pnand %p1540_p10, %p378_p12  ;;  %s404_s14 = sshll.u32 %s2307_s30, 4  ;;  %s2463_s14 = int_to_ptr.vmem [resolvable:$true] %s404_s14 }
  0x2e   : > { %s2308_s15 = smov [#allocation14]   ;;  %s2990_s6 = sld [smem:[#allocation35_spill]] }
  0x2f   : > { %s2987_s26 = scalar_select %p2448_p13, 1, 0 }
  0x30   : > { %p1824_p0 = pneg %p2448_p13  ;;  %s2465_s16 = sshll.u32 %s2308_s15, 4  ;;  %s419_s16 = int_to_ptr.vmem [resolvable:$true] %s2465_s16 }
  0x31   : > { %2988 = sst [smem:[#allocation30_spill]] %s2987_s26 }
  0x32   : > { %p2459_p2 = pnand %p1824_p0, %p2966_p11 }
  0x34   : > { %s2006_s13 = scalar_lea.hbm %s2990_s6, 128  ;;  %p2475_p4 = pneg %p2459_p2 }
  0x35   : > { %p2007_p3 = scmp.ne.s32.totalorder %s2990_s6, %s2006_s13  ;;  %p2013_p7 = scmp.lt.u32.totalorder %s2006_s13, %s2990_s6 }
  0x37   : > { %p2009_p5 = pnand %p2475_p4, %p2007_p3 }
  0x39   : > { %p2010_p6 = pneg %p2009_p5 }
  0x3b   : > { %p2015_p8 = pnand %p2013_p7, %p2010_p6 }
  0x3d   : > { %2018 = shalt.err (!%p2015_p8)
}
  0x3e   : > { %s2019_s11 = scalar_lea.vmem %s2452_s28, 128  ;;  %p2027_p0 = scmp.lt.s32.totalorder %s2452_s28, %s2452_s28 }
  0x3f   : > { %p2020_p9 = scmp.ne.s32.totalorder %s2452_s28, %s2019_s11  ;;  %p2028_p1 = scmp.lt.s32.totalorder %s2019_s11, %s2019_s11 }
  0x41   : > { %p2022_p10 = pnand %p2020_p9, %p2475_p4  ;;  %p2029_p3 = por %p2028_p1, %p2027_p0 }
  0x43   : > { %p2023_p12 = pneg %p2022_p10 }
  0x45   : > { %p2030_p5 = pnand %p2029_p3, %p2023_p12 }
  0x47   : > { %2033 = shalt.err (!%p2030_p5)
}
  0x48   : > { %s2309_s12 = smov 64   ;;  %s2310_s13 = smov 4  }
  0x49   : > { %1827 = dma.hbm_to_vmem [thread:$0]  (!%p2459_p2), %s2990_s6, 128, %s2452_s28, [#allocation10], %s2309_s12, %s2309_s12, %s2310_s13  }
  0x4a   : > { %s2992_s7 = sld [smem:[#allocation36_spill]] }
  0x50   : > { %s2034_s11 = scalar_lea.hbm %s2992_s7, 16 }
  0x51   : > { %p2035_p1 = scmp.ne.s32.totalorder %s2992_s7, %s2034_s11  ;;  %p2041_p8 = scmp.lt.u32.totalorder %s2034_s11, %s2992_s7 }
  0x53   : > { %p2037_p6 = pnand %p2035_p1, %p2475_p4 }
  0x55   : > { %p2038_p7 = pneg %p2037_p6 }
  0x57   : > { %p2043_p9 = pnand %p2041_p8, %p2038_p7 }
  0x59   : > { %2046 = shalt.err (!%p2043_p9)
}
  0x5a   : > { %s2047_s28 = scalar_lea.vmem %s2463_s14, 16  ;;  %s2054_s3 = scalar_lea.vmem %s2463_s14, 32 }
  0x5b   : > { %p2048_p10 = scmp.ne.s32.totalorder %s2463_s14, %s2047_s28  ;;  %p2055_p3 = scmp.lt.s32.totalorder %s2463_s14, %s2463_s14 }
  0x5c   : > { %p2056_p5 = scmp.lt.s32.totalorder %s2054_s3, %s2047_s28 }
  0x5d   : > { %p2050_p12 = pnand %p2048_p10, %p2475_p4 }
  0x5e   : > { %p2057_p1 = por %p2056_p5, %p2055_p3 }
  0x5f   : > { %p2051_p0 = pneg %p2050_p12 }
  0x61   : > { %p2058_p6 = pnand %p2057_p1, %p2051_p0 }
  0x63   : > { %2061 = shalt.err (!%p2058_p6)
}
  0x64   : > { %1830 = dma.hbm_to_vmem [thread:$0]  (!%p2459_p2), %s2992_s7, 16, %s2463_s14, [#allocation13]  }
  0x65   : > { %s2993_s9 = sld [smem:[#allocation38_spill]] }
  0x6b   : > { %s2062_s27 = scalar_lea.hbm %s2993_s9, 16 }
  0x6c   : > { %p2063_p7 = scmp.ne.s32.totalorder %s2993_s9, %s2062_s27  ;;  %p2069_p10 = scmp.lt.u32.totalorder %s2062_s27, %s2993_s9 }
  0x6e   : > { %p2065_p8 = pnand %p2063_p7, %p2475_p4 }
  0x70   : > { %p2066_p9 = pneg %p2065_p8 }
  0x72   : > { %p2071_p12 = pnand %p2069_p10, %p2066_p9 }
  0x74   : > { %2074 = shalt.err (!%p2071_p12)
}
  0x75   : > { %s2075_s3 = scalar_lea.vmem %s419_s16, 16  ;;  %s2082_s14 = scalar_lea.vmem %s419_s16, 32 }
  0x76   : > { %p2076_p0 = scmp.ne.s32.totalorder %s419_s16, %s2075_s3  ;;  %p2083_p1 = scmp.lt.s32.totalorder %s419_s16, %s419_s16 }
  0x77   : > { %p2084_p6 = scmp.lt.s32.totalorder %s2082_s14, %s2075_s3 }
  0x78   : > { %p2078_p3 = pnand %p2076_p0, %p2475_p4 }
  0x79   : > { %p2085_p11 = por %p2084_p6, %p2083_p1 }
  0x7a   : > { %p2079_p5 = pneg %p2078_p3 }
  0x7c   : > { %p2086_p13 = pnand %p2085_p11, %p2079_p5 }
  0x7e   : > { %2089 = shalt.err (!%p2086_p13)
}
  0x7f   : > { %1833 = dma.hbm_to_vmem [thread:$0]  (!%p2459_p2), %s2993_s9, 16, %s419_s16, [#allocation13]  }
  0x80   : > { %s2311_s26 = smov [#allocation15]   ;;  %s2994_s10 = sld [smem:[#allocation39_spill]] }
  0x81   : > { %s428_s0 = sshll.u32 %s2311_s26, 4  ;;  %s429_s0 = int_to_ptr.vmem [resolvable:$true] %s428_s0 }
  0x86   : > { %s2090_s15 = scalar_lea.hbm %s2994_s10, 1024 }
  0x87   : > { %p2091_p7 = scmp.ne.s32.totalorder %s2994_s10, %s2090_s15  ;;  %p2097_p8 = scmp.lt.u32.totalorder %s2090_s15, %s2994_s10 }
  0x89   : > { %p2093_p11 = pnand %p2091_p7, %p2475_p4 }
  0x8b   : > { %p2094_p13 = pneg %p2093_p11 }
  0x8d   : > { %p2099_p9 = pnand %p2097_p8, %p2094_p13 }
  0x8f   : > { %2102 = shalt.err (!%p2099_p9)
}
  0x90   : > { %s2103_s16 = scalar_lea.vmem %s429_s0, 1024  ;;  %p2111_p3 = scmp.lt.s32.totalorder %s429_s0, %s429_s0 }
  0x91   : > { %p2104_p10 = scmp.ne.s32.totalorder %s429_s0, %s2103_s16  ;;  %p2112_p5 = scmp.lt.s32.totalorder %s2103_s16, %s2103_s16 }
  0x93   : > { %p2106_p12 = pnand %p2104_p10, %p2475_p4  ;;  %p2113_p1 = por %p2112_p5, %p2111_p3 }
  0x95   : > { %p2107_p0 = pneg %p2106_p12 }
  0x97   : > { %p2114_p6 = pnand %p2113_p1, %p2107_p0 }
  0x99   : > { %2117 = shalt.err (!%p2114_p6)
}
  0x9a   : > { %1836 = dma.hbm_to_vmem [thread:$0]  (!%p2459_p2), %s2994_s10, 1024, %s429_s0, [#allocation16], %s2309_s12, %s2309_s12, %s2310_s13  }
  0x9b   : > { %s56_s8 = sadd.s32 1, %s2298_s23  ;;  %s60_s29 = sld [smem:[#allocation5 + %s2298_s23]] }
  0x9c   : > { %p58_p4 = scmp.ge.s32.totalorder %s56_s8, 2  ;;  %s66_s26 = sld [smem:[#allocation4 + %s2298_s23]] }
  0x9d   : > { %s83_s27 = sadd.s32 1, %s2290_s21  ;;  %p90_p7 = scmp.ne.s32.totalorder %s2290_s21, %s2286_s20 }
  0x9e   : > { %s3042_s8 = smov (%p58_p4, %s56_s8), 0  ;;  %p91_p11 = scmp.eq.s32.totalorder %s2302_s24, 0 }
  0x9f   : > { %p96_p13 = scmp.ne.s32.totalorder %s2286_s20, %s2282_s19  ;;  %s70_s30 = sld [smem:[#allocation5 + %s3042_s8]] }
  0xa0   : > { %s76_s15 = sld [smem:[#allocation4 + %s3042_s8]]  ;;  %p2578_p2 = por %p91_p11, %p90_p7 }
  0xa1   : > { %s1532_s11 = sadd.s32 4294967295, %s60_s29  ;;  %p2996_p9 = scmp.eq.s32.totalorder %s2443_s25, 0 }
  0xa2   : > { %p62_p8 = scmp.gt.s32.totalorder %s1532_s11, 0  ;;  %p2969_p12 = scmp.lt.s32.totalorder %s2302_s24, 2 }
  0xa3   : > { %p2584_p10 = por %p2996_p9, %p96_p13  ;;  %s2968_s0 = sand.u32 1, %s2290_s21  }
  0xa4   : > { %s3044_s11 = smov (!%p62_p8, %s1532_s11), 0  ;;  %s451_s28 = scalar_lea.vmem [#allocation6], %s2968_s0 }
  0xa5   : > { %s2997_s13 = scalar_select %p2584_p10, 1, 0 }
  0xa6   : > { %s3046_s11 = smov (%p62_p8, %s3044_s11), 0  ;;  %s1534_s19 = sadd.s32 4294967295, %s70_s30 }
  0xa7   : > { %s468_s3 = sshll.u32 %s451_s28, 4  ;;  %s67_s14 = sadd.s32 %s66_s26, %s3046_s11  ;;  %s2592_s3 = int_to_ptr.vmem [resolvable:$true] %s468_s3 }
  0xa8   : > { %p72_p0 = scmp.gt.s32.totalorder %s1534_s19, 0  ;;  %p68_p3 = scmp.lt.s32.totalorder %s67_s14, 0 }
  0xa9   : > { %s1806_s16 = scalar_select %p2578_p2, [#allocation5], [#allocation18] }
  0xaa   : > { %s3048_s19 = smov (!%p72_p0, %s1534_s19), 0  ;;  %s3050_s14 = smov (!%p68_p3, %s67_s14), 0 }
  0xab   : > { %s3052_s19 = smov (%p72_p0, %s3048_s19), 0  ;;  %p2600_p5 = pnand %p2969_p12, %p2578_p2 }
  0xac   : > { %s77_s5 = sadd.s32 %s76_s15, %s3052_s19  ;;  %s3056_s16 = smov (!%p2969_p12, %s1806_s16), [#allocation20] }
  0xad   : > { %p78_p1 = scmp.lt.s32.totalorder %s77_s5, 0  ;;  %s1531_s19 = sadd.s32 4294967294, %s2302_s24  }
  0xae   : > { %s1807_s29 = scalar_select %p2578_p2, %s2298_s23, 0 }
  0xaf   : > { %s3054_s5 = smov (!%p78_p1, %s77_s5), 0  ;;  %p162_p13 = scmp.ne.s32.totalorder %s2278_s18, %s2274_s17 }
  0xb0   : > { %s80_s26 = ssub.s32 %s3050_s14, %s3054_s5  ;;  %s3058_s29 = smov (!%p2969_p12, %s1807_s29), 0 }
  0xb1   : > { %p81_p6 = scmp.eq.s32.totalorder %s80_s26, 0  ;;  %s452_s15 = sld [smem:[%s3056_s16 + %s3058_s29]] }
  0xb2   : > { %s1808_s11 = scalar_select %p2578_p2, [#allocation4], [#allocation19] }
  0xb3   : > { %s2614_s30 = scalar_select %p81_p6, %s2290_s21, %s83_s27  }
  0xb4   : > { %s3060_s11 = smov (!%p2969_p12, %s1808_s11), [#allocation21]  ;;  %s152_s14 = ssub.s32 %s2298_s23, %s3042_s8 }
  0xb5   : > { %s458_s28 = sld [smem:[%s3060_s11 + %s3058_s29]]  ;;  %p153_p4 = scmp.eq.s32.totalorder %s152_s14, 0 }
  0xb6   : > { %s155_s26 = sadd.s32 1, %s2278_s18  ;;  %p168_p8 = scmp.ne.s32.totalorder %s2274_s17, %s2270_s1 }
  0xb7   : > { %s1546_s5 = sadd.s32 4294967295, %s452_s15  ;;  %p2633_p2 = por %p162_p13, %p91_p11 }
  0xb8   : > { %p454_p7 = scmp.gt.s32.totalorder %s1546_s5, 0  ;;  %p2639_p0 = por %p168_p8, %p2996_p9 }
  0xb9   : > { %s2625_s0 = scalar_select %p153_p4, %s2278_s18, %s155_s26  }
  0xba   : > { %s3062_s5 = smov (!%p454_p7, %s1546_s5), 0  ;;  %p365_p3 = scmp.eq.s32.totalorder %s2443_s25, 1 }
  0xbb   : > { %s3064_s5 = smov (%p454_p7, %s3062_s5), 0  ;;  %p371_p6 = scmp.eq.s32.totalorder %s1531_s19, 1 }
  0xbc   : > { %s3000_s12 = scalar_select %p2639_p0, 1, 0 }
  0xbd   : > { %s459_s16 = sadd.s32 %s458_s28, %s3064_s5  ;;  %p2644_p4 = por %p365_p3, %p162_p13 }
  0xbe   : > { %p460_p1 = scmp.lt.s32.totalorder %s459_s16, 0  ;;  %p2649_p11 = por %p371_p6, %p168_p8 }
  0xbf   : > { %s3001_s29 = scalar_select %p2644_p4, 1, 0 }
  0xc0   : > { %s3066_s16 = smov (!%p460_p1, %s459_s16), 0  ;;  %s506_s26 = sand.u32 1, %s2278_s18  }
  0xc1   : > { %s3002_s11 = scalar_select %p2649_p11, 1, 0 }
  0xc2   : > { %s1548_s14 = sshll.u32 %s3066_s16, 4  ;;  %s3003_s2 = sld [smem:[#allocation31_spill]] }
  0xc3   : > { %s2659_s19 = sshll.u32 %s506_s26, 3  ;;  %s3004_s5 = sand.u32 1, %s2290_s21  }
  0xc4   : > { %s449_s15 = scalar_lea.sflag [#allocation7], %s3004_s5  ;;  %p2120_p13 = pneg %p2600_p5 }
  0xc8   : > { %s2657_s28 = scalar_lea.hbm %s3003_s2, %s1548_s14  ;;  %s2123_s7 = scalar_lea.hbm %s3003_s2, 16 }
  0xc9   : > { %s2118_s9 = scalar_lea.hbm %s2657_s28, 16  ;;  %p2124_p3 = scmp.lt.u32.totalorder %s2657_s28, %s3003_s2 }
  0xca   : > { %p2119_p7 = scmp.ne.s32.totalorder %s2657_s28, %s2118_s9  ;;  %p2125_p1 = scmp.lt.u32.totalorder %s2123_s7, %s2118_s9 }
  0xcb   : > { %p2127_p12 = scmp.lt.u32.totalorder %s2118_s9, %s2657_s28 }
  0xcc   : > { %p2121_p8 = pnand %p2120_p13, %p2119_p7  ;;  %p2126_p6 = por %p2125_p1, %p2124_p3 }
  0xce   : > { %p2122_p9 = pneg %p2121_p8  ;;  %p2128_p11 = por %p2127_p12, %p2126_p6 }
  0xd0   : > { %p2129_p4 = pnand %p2128_p11, %p2122_p9 }
  0xd2   : > { %2132 = shalt.err (!%p2129_p4)
}
  0xd3   : > { %s2133_s26 = scalar_lea.vmem %s2592_s3, 16  ;;  %s2312_s5 = smov [#allocation6]  }
  0xd4   : > { %p2134_p7 = scmp.ne.s32.totalorder %s2592_s3, %s2133_s26  ;;  %s2138_s16 = sshll.u32 %s2312_s5, 4  ;;  %s2139_s16 = int_to_ptr.vmem [resolvable:$false] %s2138_s16 }
  0xd5   : > { %s2140_s10 = scalar_lea.vmem %s2139_s16, 32  ;;  %p2141_p10 = scmp.lt.s32.totalorder %s2592_s3, %s2139_s16 }
  0xd6   : > { %p2136_p8 = pnand %p2134_p7, %p2120_p13  ;;  %p2142_p3 = scmp.lt.s32.totalorder %s2140_s10, %s2133_s26 }
  0xd8   : > { %p2137_p0 = pneg %p2136_p8  ;;  %p2143_p1 = por %p2142_p3, %p2141_p10 }
  0xda   : > { %p2144_p12 = pnand %p2143_p1, %p2137_p0 }
  0xdc   : > { %2147 = shalt.err (!%p2144_p12)
}
  0xdd   : > { %1844 = dma.hbm_to_vmem [thread:$0]  (!%p2600_p5), %s2657_s28, 16, %s2592_s3, %s449_s15  }
  0xde   : > { %s1550_s9 = sshll.u32 %s2298_s23, 7  ;;  %s3005_s4 = sld [smem:[#allocation33_spill]] }
  0xdf   : > { %s508_s26 = scalar_lea.vmem [#allocation9], %s2659_s19  ;;  %p3006_p10 = scmp.lt.s32.totalorder %s2302_s24, 2 }
  0xe0   : > { %s515_s22 = sshll.u32 %s508_s26, 4  ;;  %s3008_s3 = sand.u32 1, %s2302_s24   ;;  %s2695_s22 = int_to_ptr.vmem [resolvable:$true] %s515_s22 }
  0xe1   : > { %p2701_p0 = pnand %p3006_p10, %p2633_p2  ;;  %s505_s15 = scalar_lea.sflag [#allocation10], %s3008_s3 }
  0xe3   : > { %p2150_p4 = pneg %p2701_p0 }
  0xe4   : > { %s2692_s14 = scalar_lea.hbm %s3005_s4, %s1550_s9  ;;  %s2153_s27 = scalar_lea.hbm %s3005_s4, 256 }
  0xe5   : > { %s2148_s28 = scalar_lea.hbm %s2692_s14, 128  ;;  %p2154_p2 = scmp.lt.u32.totalorder %s2692_s14, %s3005_s4 }
  0xe6   : > { %p2149_p5 = scmp.ne.s32.totalorder %s2692_s14, %s2148_s28  ;;  %p2155_p9 = scmp.lt.u32.totalorder %s2153_s27, %s2148_s28 }
  0xe7   : > { %p2157_p7 = scmp.lt.u32.totalorder %s2148_s28, %s2692_s14 }
  0xe8   : > { %p2151_p11 = pnand %p2150_p4, %p2149_p5  ;;  %p2156_p6 = por %p2155_p9, %p2154_p2 }
  0xea   : > { %p2152_p13 = pneg %p2151_p11  ;;  %p2158_p8 = por %p2157_p7, %p2156_p6 }
  0xec   : > { %p2159_p3 = pnand %p2158_p8, %p2152_p13 }
  0xee   : > { %2162 = shalt.err (!%p2159_p3)
}
  0xef   : > { %s2163_s6 = scalar_lea.vmem %s2695_s22, 128  ;;  %s2313_s7 = smov [#allocation9]  }
  0xf0   : > { %p2164_p1 = scmp.ne.s32.totalorder %s2695_s22, %s2163_s6  ;;  %s2168_s26 = sshll.u32 %s2313_s7, 4  ;;  %s2169_s26 = int_to_ptr.vmem [resolvable:$false] %s2168_s26 }
  0xf1   : > { %s2170_s3 = scalar_lea.vmem %s2169_s26, 256  ;;  %p2171_p5 = scmp.lt.s32.totalorder %s2695_s22, %s2169_s26 }
  0xf2   : > { %p2166_p12 = pnand %p2164_p1, %p2150_p4  ;;  %p2172_p11 = scmp.lt.s32.totalorder %s2170_s3, %s2163_s6 }
  0xf4   : > { %p2167_p10 = pneg %p2166_p12  ;;  %p2173_p2 = por %p2172_p11, %p2171_p5 }
  0xf6   : > { %p2174_p9 = pnand %p2173_p2, %p2167_p10 }
  0xf8   : > { %2177 = shalt.err (!%p2174_p9)
}
  0xf9   : > { %1847 = dma.hbm_to_vmem [thread:$0]  (!%p2701_p0), %s2692_s14, 128, %s2695_s22, %s505_s15  }
  0xfa   : > { %s3009_s28 = sld [smem:[#allocation30_spill]] }
 0x100   : > { %p3010_p13 = scmp.ne.s32.totalorder %s3009_s28, 0 }
 0x101   : > { %s533_s19 = sand.u32 (!%p3010_p13), 1, %s2286_s20   ;;  %p3011_p4 = scmp.ne.s32.totalorder (!%p3010_p13), %s2997_s13, 0 }
 0x102   : > { %531 = sbr.rel (%p3010_p13) target bundleno = 1577 (0x629), region = 64  ;;  %s534_s16 = scalar_lea.sflag (!%p3010_p13), [#allocation7], %s533_s19 }
 0x103   : > { %s2735_s27 = scalar_lea.vmem (!%p3010_p13), [#allocation6], %s533_s19 }
 0x109   : > { %2245 = dma.done.wait (%p3011_p4), %s534_s16, 16  }
 0x10a   : > { %2247 = vsyncadd (%p3011_p4), %s534_s16, 4294967280  ;;  %s541_s5 = sand.u32 1, %s2443_s25   ;;  %s2973_s14 = sand.u32 1, %s2274_s17  }
 0x10b   : > { %s2745_s22 = sshll.u32 %s2973_s14, 3  ;;  %s542_s15 = scalar_lea.sflag [#allocation10], %s541_s5 }
 0x10c   : > { %p3012_p0 = scmp.ne.s32.totalorder %s3000_s12, 0 }
 0x10e   : > { %2249 = dma.done.wait (%p3012_p0), %s542_s15, 128  }
 0x10f   : > { %2251 = vsyncadd (%p3012_p0), %s542_s15, 4294967168  ;;  %p3013_p6 = scmp.eq.s32.totalorder %s2443_s25, 0 }
 0x111   : > { %2253 = dma.done.wait (%p3013_p6), [#allocation10], 128   ;;  %p3014_p7 = pmov %p3013_p6 }
 0x112   : > { %p3015_p8 = pmov %p3013_p6 }
 0x113   : > { %2255 = vsyncadd (%p3014_p7), [#allocation10], 4294967168 }
 0x114   : > { %2257 = dma.done.wait (%p3015_p8), [#allocation13], 32   ;;  %p3016_p3 = pmov %p3013_p6 }
 0x116   : > { %2259 = vsyncadd (%p3016_p3), [#allocation13], 4294967264  ;;  %p3017_p1 = pmov %p3016_p3 }
 0x118   : > { %2261 = dma.done.wait (%p3017_p1), [#allocation16], 1024   ;;  %p3018_p12 = pmov %p3017_p1 }
 0x119   : > { %s3019_s13 = sld [smem:[#allocation29_spill]]  ;;  %v2314_v0 = vmov 0.0   ;;  %s3020_s19 = sld [smem:[#allocation34_spill]] }
 0x11a   : > { %2263 = vsyncadd (%p3018_p12), [#allocation16], 4294966272  ;;  %668 = vst [vmem:[#allocation2] sm:$0xff] %v2314_v0  ;;  %s622_s4 = scalar_lea.vmem [#allocation17], %s2745_s22 }
 0x11f   : > { %p659_p10 = scmp.lt.s32.totalorder %s3019_s13, 1  ;;  %s633_s12 = sld [smem:[#allocation5 + %s3019_s13]] }
 0x120   : > { %s669_s9 = sld [smem:[#allocation5 + %s3019_s13]] }
 0x121   : > { %s660_s6 = scalar_select %p659_p10, %s3019_s13, 1 }
 0x122   : > { %s639_s26 = sld [smem:[#allocation4 + %s3019_s13]] }
 0x123   : > { %s1562_s7 = sshll.u32 %s660_s6, 3  ;;  %s3021_s6 = sld [smem:[#allocation32_spill]] }
 0x124   : > { %s2773_s25 = scalar_lea.vmem %s3020_s19, %s1562_s7 }
 0x125   : > { %s1558_s16 = sadd.s32 4294967295, %s633_s12 }
 0x126   : > { %p635_p5 = scmp.gt.s32.totalorder %s1558_s16, 0  ;;  %p1564_p9 = scmp.le.s32.totalorder %s669_s9, 0 }
 0x127   : > { %v1948_v1 = vld [vmem:[#allocation11] sm:$0xff] (!%p1564_p9)   ;;  %vm745_vm0 = vcmask (!%p1564_p9), 130048   ;;  %s3022_s10 = sld [smem:[#allocation37_spill]] (!%p1564_p9)  ;;  %v1565_v18 = vld [vmem:[#allocation12] ss:$0 sm:$0xff] (!%p1564_p9)  ;;  %vm2316_vm1 = vmmov (!%p1564_p9), 0  }
 0x128   : > { %s3068_s16 = smov (!%p635_p5, %s1558_s16), 0  ;;  %1688 = vmatprep.subr.bf16.mxu0 (!%p1564_p9), %v1948_v1 }
 0x129   : > { %s3070_s16 = smov (%p635_p5, %s3068_s16), 0  ;;  %1689 = vmatpush3.bf16.msra.mxu0 (!%p1564_p9), %v1948_v1 }
 0x12a   : > { %s640_s5 = sadd.s32 %s639_s26, %s3070_s16 }
 0x12b   : > { %p641_p11 = scmp.lt.s32.totalorder %s640_s5, 0 }
 0x12d   : > { %s3072_s5 = smov (!%p641_p11, %s640_s5), 0  ;;  %673 = sbr.rel (%p1564_p9) target bundleno = 997 (0x3e5), region = 96 }
 0x12e   : > { %s1560_s15 = sshll.u32 %s3072_s5, 4  ;;  %v1957_v6 = vld [vmem:[%s3022_s10] sm:$0xff] (!%p1564_p9)   ;;  %v1958_v7 = vld [vmem:[%s3022_s10 + $0x8] sm:$0xff] (!%p1564_p9)   ;;  %v1959_v9 = vld [vmem:[%s3022_s10 + $0x10] sm:$0xff] (!%p1564_p9)  }
 0x12f   : > { %p644_p2 = scmp.lt.s32.totalorder %s1560_s15, 15  ;;  %1706 = vmatprep.subr.bf16.mxu1 (!%p1564_p9), %v1957_v6  ;;  %v1960_v10 = vld [vmem:[%s3022_s10 + $0x18] sm:$0xff] (!%p1564_p9)   ;;  %v1961_v13 = vld [vmem:[%s3022_s10 + $0x20] sm:$0xff] (!%p1564_p9)   ;;  %v1962_v14 = vld [vmem:[%s3022_s10 + $0x28] sm:$0xff] (!%p1564_p9)  }
 0x130   : > { %1707 = vmatpush3.bf16.msra.mxu1 (!%p1564_p9), %v1957_v6  ;;  %v1963_v16 = vld [vmem:[%s3022_s10 + $0x30] sm:$0xff] (!%p1564_p9)   ;;  %v1964_v17 = vld [vmem:[%s3022_s10 + $0x38] sm:$0xff] (!%p1564_p9)  }
 0x131   : > { %s3074_s15 = smov (!%p644_p2, %s1560_s15), 15  ;;  %1708 = vmatprep.subr.bf16.mxu1 (!%p1564_p9), %v1958_v7 }
 0x132   : > { %s1561_s14 = sshll.u32 %s3074_s15, 2 }
 0x133   : > { %s2778_s13 = scalar_lea.vmem %s3021_s6, %s1561_s14 }
 0x134   : > { %v1949_v2 = vld [vmem:[%s2778_s13] sm:$0xff]   ;;  %v1950_v3 = vld [vmem:[%s2778_s13 + $0x8] sm:$0xff]   ;;  %v1951_v4 = vld [vmem:[%s2778_s13 + $0x10] sm:$0xff]   ;;  %1709 = vmatpush3.bf16.msra.mxu1 %v1958_v7 }
 0x135   : > { %1690 = vmatprep.mubr.msk.bf16.mxu0 %vm745_vm0, %v1949_v2  ;;  %v1952_v5 = vld [vmem:[%s2778_s13 + $0x18] sm:$0xff]   ;;  %v1953_v8 = vld [vmem:[%s2778_s13 + $0x20] sm:$0xff]   ;;  %1710 = vmatprep.subr.bf16.mxu1 %v1959_v9  ;;  %v1954_v11 = vld [vmem:[%s2778_s13 + $0x28] sm:$0xff]  }
 0x136   : > { %1691 = vmatmul.mubr.msk.bf16.vlgmr.msra.gmra.mrb[0].mxu0 %vm745_vm0, %v1950_v3  ;;  %v1955_v12 = vld [vmem:[%s2778_s13 + $0x30] sm:$0xff]   ;;  %v1956_v15 = vld [vmem:[%s2778_s13 + $0x38] sm:$0xff]   ;;  %s3023_s13 = sld [smem:[#allocation29_spill]] }
 0x137   : > { %1694 = vmatprep.mubr.msk.bf16.mxu0 %vm745_vm0, %v1951_v4 }
 0x138   : > { %1711 = vmatpush3.bf16.msra.mxu1 %v1959_v9 }
 0x139   : > { %1712 = vmatprep.subr.bf16.mxu1 %v1960_v10 }
 0x13c   : > { %1713 = vmatpush3.bf16.msra.mxu1 %v1960_v10  ;;  %s1592_s9 = sshll.u32 %s3023_s13, 3 }
 0x13d   : > { %1714 = vmatprep.subr.bf16.mxu1 %v1961_v13 }
 0x13e   : > { %1695 = vmatmul.mubr.msk.bf16.gmra.mrb[4].mxu0 %vm745_vm0, %v1952_v5 }
 0x13f   : > { %1698 = vmatprep.mubr.msk.bf16.mxu0 %vm745_vm0, %v1953_v8 }
 0x140   : > { %1715 = vmatpush3.bf16.msra.mxu1 %v1961_v13 }
 0x141   : > { %1716 = vmatprep.subr.bf16.mxu1 %v1962_v14 }
 0x144   : > { %1717 = vmatpush3.bf16.msra.mxu1 %v1962_v14  ;;  %v1583_v14 = vld [vmem:[#allocation14] ss:$0 sm:$0xff] }
 0x145   : > { %1718 = vmatprep.subr.bf16.mxu1 %v1963_v16 }
 0x146   : > { %1699 = vmatmul.mubr.msk.bf16.gmra.mrb[8].mxu0 %vm745_vm0, %v1954_v11 }
 0x147   : > { %1702 = vmatprep.mubr.msk.bf16.mxu0 %vm745_vm0, %v1955_v12  ;;  %v2315_v12 = vmov 0.0  }
 0x148   : > { %1719 = vmatpush3.bf16.msra.mxu1 %v1963_v16  ;;  %1738 = vmatprep.subr.bf16.mxu0 %v2315_v12 }
 0x149   : > { %1720 = vmatprep.subr.bf16.mxu1 %v1964_v17 }
 0x14c   : > { %1721 = vmatpush3.bf16.msra.mxu1 %v1964_v17 }
 0x14e   : > { %1703 = vmatmul.mubr.msk.bf16.gmra.mrb[12].mxu0 %vm745_vm0, %v1956_v15 }
 0x14f   : > { %1754 = vmatprep.mubr.msk.bf16.mxu0 %vm2316_vm1, %v2315_v12 }
 0x209   : > { %v1692_v19 = vpop.f32.mrb[0].mxu0 }
 0x20a   : > { %v813_v20 = vadd.f32 %v1692_v19, %v1565_v18  ;;  %v804_v21 = vpop.f32.mrb[1].mxu0 }
 0x20b   : > { %v805_v22 = vadd.f32 %v1565_v18, %v804_v21  ;;  %v1693_v23 = vpop.f32.mrb[2].mxu0 }
 0x20c   : > { %v816_v24 = vadd.f32 %v1693_v23, %v1565_v18  ;;  %v807_v25 = vpop.f32.mrb[3].mxu0  ;;  %v869_v27 = vmax.f32 %v813_v20, 0.0 }
 0x20d   : > { %v808_v26 = vadd.f32 %v1565_v18, %v807_v25  ;;  %v867_v29 = vmax.f32 %v805_v22, 0.0 }
 0x20e   : > { %v870_v28 = vmax.f32 %v816_v24, 0.0 }
 0x20f   : > { %v868_v30 = vmax.f32 %v808_v26, 0.0 }
 0x210   : > { %v884_v31 = vpack.c.bf16 %v870_v28, %v869_v27 }
 0x211   : > { %v1696_v32 = vpop.f32.mrb[4].mxu0  ;;  %v883_v33 = vpack.c.bf16 %v868_v30, %v867_v29 }
 0x212   : > { %v829_v34 = vadd.f32 %v1696_v32, %v1565_v18  ;;  %v820_v35 = vpop.f32.mrb[5].mxu0 }
 0x213   : > { %v821_v36 = vadd.f32 %v1565_v18, %v820_v35  ;;  %v1697_v37 = vpop.f32.mrb[6].mxu0  ;;  %1722 = vmatprep.mubr.bf16.mxu1 %v883_v33 }
 0x214   : > { %v832_v38 = vadd.f32 %v1697_v37, %v1565_v18  ;;  %v823_v39 = vpop.f32.mrb[7].mxu0  ;;  %1723 = vmatmul.mubr.bf16.vlgmr.msra.gmra.mrb[0].mxu1 %v884_v31  ;;  %v873_v41 = vmax.f32 %v829_v34, 0.0 }
 0x215   : > { %v824_v40 = vadd.f32 %v1565_v18, %v823_v39  ;;  %v871_v43 = vmax.f32 %v821_v36, 0.0 }
 0x216   : > { %v874_v42 = vmax.f32 %v832_v38, 0.0 }
 0x217   : > { %v872_v44 = vmax.f32 %v824_v40, 0.0 }
 0x218   : > { %v886_v45 = vpack.c.bf16 %v874_v42, %v873_v41 }
 0x219   : > { %v885_v46 = vpack.c.bf16 %v872_v44, %v871_v43  ;;  %v1700_v47 = vpop.f32.mrb[8].mxu0  ;;  %v1060_v43 = vlaneseq }
 0x21a   : > { %v845_v48 = vadd.f32 %v1700_v47, %v1565_v18  ;;  %v836_v49 = vpop.f32.mrb[9].mxu0 }
 0x21b   : > { %v837_v50 = vadd.f32 %v1565_v18, %v836_v49  ;;  %v1701_v51 = vpop.f32.mrb[10].mxu0  ;;  %1726 = vmatprep.mubr.bf16.mxu1 %v885_v46  ;;  %v1061_v47 = vshrl.u32 %v1060_v43, 7  ;;  %v1062_v49 = vstv %s1592_s9 }
 0x21c   : > { %v848_v52 = vadd.f32 %v1701_v51, %v1565_v18  ;;  %v839_v53 = vpop.f32.mrb[11].mxu0  ;;  %1727 = vmatmul.mubr.bf16.gmra.mrb[4].mxu1 %v886_v45  ;;  %v877_v55 = vmax.f32 %v845_v48, 0.0 }
 0x21d   : > { %v840_v54 = vadd.f32 %v1565_v18, %v839_v53  ;;  %v875_v57 = vmax.f32 %v837_v50, 0.0 }
 0x21e   : > { %v878_v56 = vmax.f32 %v848_v52, 0.0 }
 0x21f   : > { %v876_v58 = vmax.f32 %v840_v54, 0.0 }
 0x220   : > { %v888_v59 = vpack.c.bf16 %v878_v56, %v877_v55  ;;  %v1063_v56 = vadd.s32 %v1062_v49, %v1061_v47 }
 0x221   : > { %v887_v60 = vpack.c.bf16 %v876_v58, %v875_v57  ;;  %v1704_v61 = vpop.f32.mrb[12].mxu0  ;;  %v1593_v58 = vld [vmem:[%s2735_s27] ss:$0 sm:$0xff] }
 0x222   : > { %v861_v62 = vadd.f32 %v1704_v61, %v1565_v18  ;;  %v852_v63 = vpop.f32.mrb[13].mxu0  ;;  %vm1069_vm2 = vcmp.eq.s32.totalorder %v1593_v58, %v1063_v56 }
 0x223   : > { %v853_v1 = vadd.f32 %v1565_v18, %v852_v63  ;;  %v1705_v2 = vpop.f32.mrb[14].mxu0  ;;  %1730 = vmatprep.mubr.bf16.mxu1 %v887_v60  ;;  %vm1595_vm3 = vmpackc.low %vm1069_vm2, %vm1069_vm2  ;;  %v1073_v60 = vld [vmem:[#allocation2] sm:$0xff] }
 0x224   : > { %v864_v3 = vadd.f32 %v1705_v2, %v1565_v18  ;;  %v855_v4 = vpop.f32.mrb[15].mxu0  ;;  %1731 = vmatmul.mubr.bf16.gmra.mrb[8].mxu1 %v888_v59  ;;  %v881_v6 = vmax.f32 %v861_v62, 0.0  ;;  %v2317_v59 = vmov 1.0|1.0  }
 0x225   : > { %v856_v5 = vadd.f32 %v1565_v18, %v855_v4  ;;  %v879_v8 = vmax.f32 %v853_v1, 0.0 }
 0x226   : > { %v882_v7 = vmax.f32 %v864_v3, 0.0 }
 0x227   : > { %v880_v9 = vmax.f32 %v856_v5, 0.0 }
 0x228   : > { %v890_v10 = vpack.c.bf16 %v882_v7, %v881_v6 }
 0x229   : > { %v889_v11 = vpack.c.bf16 %v880_v9, %v879_v8 }
 0x22b   : > { %1734 = vmatprep.mubr.bf16.mxu1 %v889_v11 }
 0x22c   : > { %1735 = vmatmul.mubr.bf16.gmra.mrb[12].mxu1 %v890_v10 }
 0x2e7   : > { %v1724_v13 = vpop.f32.mrb[0].mxu1 }
 0x2e8   : > { %v996_v15 = vpop.f32.mrb[1].mxu1  ;;  %v1005_v17 = vadd.f32 %v1724_v13, %v1583_v14 }
 0x2e9   : > { %v1725_v16 = vpop.f32.mrb[2].mxu1  ;;  %v997_v20 = vadd.f32 %v1583_v14, %v996_v15 }
 0x2ea   : > { %v1008_v18 = vadd.f32 %v1725_v16, %v1583_v14  ;;  %v999_v19 = vpop.f32.mrb[3].mxu1 }
 0x2eb   : > { %v1000_v21 = vadd.f32 %v1583_v14, %v999_v19 }
 0x2ec   : > { %v1075_v22 = vpack.c.bf16 %v1008_v18, %v1005_v17 }
 0x2ed   : > { %v1074_v23 = vpack.c.bf16 %v1000_v21, %v997_v20 }
 0x2ef   : > { %v1728_v24 = vpop.f32.mrb[4].mxu1  ;;  %1739 = vmatpush3.bf16.msra.mxu0 %v1074_v23 }
 0x2f0   : > { %v1012_v25 = vpop.f32.mrb[5].mxu1  ;;  %1740 = vmatprep.subr.bf16.mxu0 %v2315_v12  ;;  %v1021_v27 = vadd.f32 %v1728_v24, %v1583_v14 }
 0x2f1   : > { %v1729_v26 = vpop.f32.mrb[6].mxu1  ;;  %v1013_v30 = vadd.f32 %v1583_v14, %v1012_v25 }
 0x2f2   : > { %v1024_v28 = vadd.f32 %v1729_v26, %v1583_v14  ;;  %v1015_v29 = vpop.f32.mrb[7].mxu1 }
 0x2f3   : > { %v1016_v31 = vadd.f32 %v1583_v14, %v1015_v29  ;;  %1741 = vmatpush3.bf16.msra.mxu0 %v1075_v22 }
 0x2f4   : > { %v1077_v32 = vpack.c.bf16 %v1024_v28, %v1021_v27  ;;  %1742 = vmatprep.subr.bf16.mxu0 %v2315_v12 }
 0x2f5   : > { %v1076_v33 = vpack.c.bf16 %v1016_v31, %v1013_v30 }
 0x2f7   : > { %v1732_v34 = vpop.f32.mrb[8].mxu1  ;;  %1743 = vmatpush3.bf16.msra.mxu0 %v1076_v33 }
 0x2f8   : > { %v1028_v35 = vpop.f32.mrb[9].mxu1  ;;  %1744 = vmatprep.subr.bf16.mxu0 %v2315_v12  ;;  %v1037_v37 = vadd.f32 %v1732_v34, %v1583_v14 }
 0x2f9   : > { %v1733_v36 = vpop.f32.mrb[10].mxu1  ;;  %v1029_v40 = vadd.f32 %v1583_v14, %v1028_v35 }
 0x2fa   : > { %v1040_v38 = vadd.f32 %v1733_v36, %v1583_v14  ;;  %v1031_v39 = vpop.f32.mrb[11].mxu1 }
 0x2fb   : > { %v1032_v41 = vadd.f32 %v1583_v14, %v1031_v39  ;;  %1745 = vmatpush3.bf16.msra.mxu0 %v1077_v32 }
 0x2fc   : > { %v1079_v42 = vpack.c.bf16 %v1040_v38, %v1037_v37  ;;  %1746 = vmatprep.subr.bf16.mxu0 %v2315_v12 }
 0x2fd   : > { %v1078_v44 = vpack.c.bf16 %v1032_v41, %v1029_v40 }
 0x2ff   : > { %v1736_v45 = vpop.f32.mrb[12].mxu1  ;;  %1747 = vmatpush3.bf16.msra.mxu0 %v1078_v44 }
 0x300   : > { %v1044_v46 = vpop.f32.mrb[13].mxu1  ;;  %1748 = vmatprep.subr.bf16.mxu0 %v2315_v12  ;;  %v1053_v50 = vadd.f32 %v1736_v45, %v1583_v14 }
 0x301   : > { %v1737_v48 = vpop.f32.mrb[14].mxu1  ;;  %v1045_v53 = vadd.f32 %v1583_v14, %v1044_v46 }
 0x302   : > { %v1056_v51 = vadd.f32 %v1737_v48, %v1583_v14  ;;  %v1047_v52 = vpop.f32.mrb[15].mxu1 }
 0x303   : > { %v1048_v54 = vadd.f32 %v1583_v14, %v1047_v52  ;;  %1749 = vmatpush3.bf16.msra.mxu0 %v1079_v42 }
 0x304   : > { %v1081_v55 = vpack.c.bf16 %v1056_v51, %v1053_v50  ;;  %1750 = vmatprep.subr.bf16.mxu0 %v2315_v12 }
 0x305   : > { %v1080_v57 = vpack.c.bf16 %v1048_v54, %v1045_v53 }
 0x307   : > { %1751 = vmatpush3.bf16.msra.mxu0 %v1080_v57 }
 0x308   : > { %1752 = vmatprep.subr.bf16.mxu0 %v2315_v12 }
 0x30b   : > { %1753 = vmatpush3.bf16.msra.mxu0 %v1081_v55 }
 0x30e   : > { %1755 = vmatmul.mubr.msk.bf16.vlgmr.msra.gmra.mrb[16].mxu0 %vm1595_vm3, %v2317_v59 }
 0x3e1   : > { %v1116_v61 = vpop.f32.mrb[16].mxu0 }
 0x3e2   : > { %v1122_v62 = vadd.f32 %v1116_v61, %v1073_v60  ;;  %v1756_v63 = vpop.f32.mrb[17].mxu0 }
 0x3e3   : > { %v1119_v1 = vpop.f32.mrb[18].mxu0 }
 0x3e4   : > { %1123 = vst [vmem:[#allocation2] sm:$0xff] %v1122_v62  ;;  %v1757_v2 = vpop.f32.mrb[19].mxu0 }
 0x3e5 PF: > { %v1128_v3 = vld [vmem:[%s2773_s25] sm:$0xff]  ;;  %1758 = vmatprep.subr.bf16.mxu0 %v2314_v0  ;;  %1778 = vmatprep.subr.bf16.mxu1 %v2314_v0  ;;  %v2318_v4 = vmov 0   ;;  %v1967_v6 = vld [vmem:[#allocation15 + $0x8] sm:$0xff]   ;;  %vm2319_vm4 = vmmov 0   ;;  %v1968_v7 = vld [vmem:[#allocation15 + $0x10] sm:$0xff]   ;;  %s3024_s7 = sld [smem:[#allocation40_spill]] }
 0x3e6   : > { %1965 = vset.pattern.permute.xlu0 %v2318_v4  ;;  %v1966_v5 = vld [vmem:[#allocation15] sm:$0xff]   ;;  %1774 = vmatprep.mubr.msk.bf16.mxu0 %vm2319_vm4, %v2314_v0  ;;  %v1969_v9 = vld [vmem:[#allocation15 + $0x18] sm:$0xff]   ;;  %v1971_v13 = vld [vmem:[#allocation15 + $0x28] sm:$0xff]   ;;  %s3025_s9 = sld [smem:[#allocation29_spill]]  ;;  %s3026_s26 = scalar_lea.vmem [#allocation9], %s2745_s22 }
 0x3e7   : > { %1131 = vperm.xlu0 %1965, %v1128_v3   ;;  %1759 = vmatpush3.bf16.msra.mxu0 %v1966_v5  ;;  %v1970_v11 = vld [vmem:[#allocation15 + $0x20] sm:$0xff]   ;;  %v1972_v15 = vld [vmem:[#allocation15 + $0x30] sm:$0xff]   ;;  %v1973_v17 = vld [vmem:[#allocation15 + $0x38] sm:$0xff]   ;;  %s3027_s19 = sld [smem:[#allocation41_spill]]  ;;  %s1370_s5 = sshll.u32 %s622_s4, 4  ;;  %s2888_s5 = int_to_ptr.vmem [resolvable:$true] %s1370_s5 }
 0x3e8   : > { %1760 = vmatprep.subr.bf16.mxu0 %v2314_v0  ;;  %1794 = vmatprep.mubr.msk.bf16.mxu1 %vm2319_vm4, %v2314_v0  ;;  %v1135_v25 = vld [vmem:[%s3026_s26] sm:$0xff]  ;;  %s3028_s2 = sld [smem:[#allocation42_spill]]  ;;  %s3029_s12 = sand.u32 1, %s2274_s17  }
 0x3e9   : > { %s1357_s13 = scalar_lea.sflag [#allocation8], %s3029_s12  ;;  %p3030_p4 = scmp.ne.s32.totalorder %s3001_s29, 0 }
 0x3ea   : > { %s2320_s27 = smov [#allocation17]  }
 0x3eb   : > { %1761 = vmatpush3.bf16.msra.mxu0 %v1967_v6  ;;  %v1974_v8 = vld [vmem:[%s3024_s7] sm:$0xff]   ;;  %v1975_v10 = vld [vmem:[%s3024_s7 + $0x8] sm:$0xff]   ;;  %v1976_v12 = vld [vmem:[%s3024_s7 + $0x10] sm:$0xff]   ;;  %s2182_s25 = sshll.u32 %s2320_s27, 4  ;;  %s2183_s25 = int_to_ptr.vmem [resolvable:$false] %s2182_s25 }
 0x3ec   : > { %1762 = vmatprep.subr.bf16.mxu0 %v2314_v0  ;;  %1779 = vmatpush3.bf16.msra.mxu1 %v1974_v8  ;;  %v1977_v14 = vld [vmem:[%s3024_s7 + $0x18] sm:$0xff]   ;;  %v1978_v16 = vld [vmem:[%s3024_s7 + $0x20] sm:$0xff]   ;;  %v1979_v18 = vld [vmem:[%s3024_s7 + $0x28] sm:$0xff]   ;;  %s1615_s16 = sshll.u32 %s3025_s9, 7  ;;  %s2178_s9 = scalar_lea.vmem %s2888_s5, 128 }
 0x3ed   : > { %1780 = vmatprep.subr.bf16.mxu1 %v2314_v0  ;;  %v1127_v19 = vld [vmem:[#allocation2] sm:$0xff]  ;;  %v1980_v23 = vld [vmem:[%s3024_s7 + $0x30] sm:$0xff]   ;;  %v1981_v24 = vld [vmem:[%s3024_s7 + $0x38] sm:$0xff]   ;;  %p2179_p13 = scmp.ne.s32.totalorder %s2888_s5, %s2178_s9  ;;  %s2184_s26 = scalar_lea.vmem %s2183_s25, 256 }
 0x3ee   : > { %s2886_s14 = scalar_lea.hbm %s3028_s2, %s1615_s16  ;;  %p2185_p7 = scmp.lt.s32.totalorder %s2888_s5, %s2183_s25 }
 0x3ef   : > { %1763 = vmatpush3.bf16.msra.mxu0 %v1968_v7  ;;  %p2180_p0 = pnand %p2179_p13, %p3030_p4  ;;  %p2186_p8 = scmp.lt.s32.totalorder %s2184_s26, %s2178_s9 }
 0x3f0   : > { %1764 = vmatprep.subr.bf16.mxu0 %v2314_v0  ;;  %1781 = vmatpush3.bf16.msra.mxu1 %v1975_v10 }
 0x3f1   : > { %1782 = vmatprep.subr.bf16.mxu1 %v2314_v0  ;;  %p2181_p6 = pneg %p2180_p0  ;;  %p2187_p3 = por %p2186_p8, %p2185_p7 }
 0x3f3   : > { %1765 = vmatpush3.bf16.msra.mxu0 %v1969_v9  ;;  %p2188_p1 = pnand %p2187_p3, %p2181_p6 }
 0x3f4   : > { %1766 = vmatprep.subr.bf16.mxu0 %v2314_v0  ;;  %1783 = vmatpush3.bf16.msra.mxu1 %v1976_v12 }
 0x3f5   : > { %1784 = vmatprep.subr.bf16.mxu1 %v2314_v0 }
 0x3f7   : > { %1767 = vmatpush3.bf16.msra.mxu0 %v1970_v11 }
 0x3f8   : > { %1768 = vmatprep.subr.bf16.mxu0 %v2314_v0  ;;  %1785 = vmatpush3.bf16.msra.mxu1 %v1977_v14 }
 0x3f9   : > { %1786 = vmatprep.subr.bf16.mxu1 %v2314_v0 }
 0x3fb   : > { %1769 = vmatpush3.bf16.msra.mxu0 %v1971_v13 }
 0x3fc   : > { %1770 = vmatprep.subr.bf16.mxu0 %v2314_v0  ;;  %1787 = vmatpush3.bf16.msra.mxu1 %v1978_v16 }
 0x3fd   : > { %1788 = vmatprep.subr.bf16.mxu1 %v2314_v0 }
 0x3ff   : > { %1771 = vmatpush3.bf16.msra.mxu0 %v1972_v15 }
 0x400   : > { %1772 = vmatprep.subr.bf16.mxu0 %v2314_v0  ;;  %1789 = vmatpush3.bf16.msra.mxu1 %v1979_v18 }
 0x401   : > { %1790 = vmatprep.subr.bf16.mxu1 %v2314_v0 }
 0x403   : > { %1773 = vmatpush3.bf16.msra.mxu0 %v1973_v17 }
 0x404   : > { %1791 = vmatpush3.bf16.msra.mxu1 %v1980_v23 }
 0x405   : > { %1792 = vmatprep.subr.bf16.mxu1 %v2314_v0  ;;  %v1605_v0 = vld [vmem:[%s3027_s19] ss:$0 sm:$0xff] }
 0x408   : > { %1793 = vmatpush3.bf16.msra.mxu1 %v1981_v24 }
 0x466   : > { %v1132_v20 = vpop.permute.xlu0 %1131 }
 0x467   : > { %v1134_v21 = vmul.f32 %v1132_v20, %v1127_v19 }
 0x469   : > { %v1136_v22 = vpack.c.bf16 %v1134_v21, %v1134_v21 }
 0x46b   : > { %1775 = vmatmul.mubr.bf16.vlgmr.msra.gmra.mrb[0].mxu0 %v1136_v22 }
 0x53e   : > { %v1235_v26 = vpop.f32.mrb[0].mxu0 }
 0x53f   : > { %v1241_v27 = vadd.f32 %v1235_v26, %v1135_v25  ;;  %v1776_v28 = vpop.f32.mrb[1].mxu0 }
 0x540   : > { %v1238_v29 = vpop.f32.mrb[2].mxu0 }
 0x541   : > { %v1242_v30 = vmax.f32 %v1241_v27, 0.0  ;;  %v1777_v31 = vpop.f32.mrb[3].mxu0 }
 0x543   : > { %v1243_v32 = vpack.c.bf16 %v1242_v30, %v1242_v30 }
 0x545   : > { %1795 = vmatmul.mubr.bf16.vlgmr.msra.gmra.mrb[0].mxu1 %v1243_v32 }
 0x618   : > { %v1349_v33 = vpop.f32.mrb[0].mxu1 }
 0x619   : > { %v1350_v34 = vadd.f32 %v1605_v0, %v1349_v33  ;;  %v1796_v35 = vpop.f32.mrb[1].mxu1 }
 0x61a   : > { %v1352_v36 = vpop.f32.mrb[2].mxu1 }
 0x61b   : > { %1355 = vst [vmem:[%s622_s4] sm:$0xff] %v1350_v34  ;;  %v1797_v37 = vpop.f32.mrb[3].mxu1 }
 0x61c   : > { %2191 = shalt.err (!%p2188_p1)
}
 0x61d   : > { %s2192_s4 = scalar_lea.hbm %s2886_s14, 128  ;;  %s2196_s28 = scalar_lea.hbm %s3028_s2, 256 }
 0x61e   : > { %p2193_p12 = scmp.ne.s32.totalorder %s2886_s14, %s2192_s4  ;;  %p2197_p11 = scmp.lt.u32.totalorder %s2886_s14, %s3028_s2 }
 0x61f   : > { %p2198_p2 = scmp.lt.u32.totalorder %s2196_s28, %s2192_s4  ;;  %p2200_p13 = scmp.lt.u32.totalorder %s2192_s4, %s2886_s14 }
 0x620   : > { %p2194_p10 = pnand %p2193_p12, %p3030_p4 }
 0x621   : > { %p2199_p9 = por %p2198_p2, %p2197_p11 }
 0x622   : > { %p2195_p5 = pneg %p2194_p10 }
 0x623   : > { %p2201_p0 = por %p2200_p13, %p2199_p9 }
 0x625   : > { %p2202_p6 = pnand %p2201_p0, %p2195_p5 }
 0x627   : > { %2205 = shalt.err (!%p2202_p6)
}
 0x628   : > { %1822 = dma.vmem_to_hbm [thread:$0]  (%p3030_p4), %s2888_s5, 128, %s2886_s14, %s1357_s13  }
 0x629 PF: > { %s1382_s15 = sand.u32 1, %s2270_s1   ;;  %p3031_p7 = scmp.ne.s32.totalorder %s3002_s11, 0 }
 0x62a   : > { %p3032_p8 = scmp.ge.s32.totalorder %s2302_s24, 2  ;;  %s1383_s6 = scalar_lea.sflag [#allocation8], %s1382_s15 }
 0x62c   : > { %p1849_p3 = pnand %p3032_p8, %p3031_p7 }
 0x62e   : > { %2265 = dma.done.wait (!%p1849_p3), %s1383_s6, 128  }
 0x62f   : > { %2267 = vsyncadd (!%p1849_p3), %s1383_s6, 4294967168  ;;  %s44_s24 = sadd.s32 1, %s2302_s24   ;;  %s3033_s1 = smov %s2274_s17 }
 0x630   : > { %p41_p1 = scmp.ge.s32.totalorder %s44_s24, 4   ;;  %s3034_s17 = smov %s2278_s18 }
 0x631   : > { %s3035_s18 = smov %s2625_s0  ;;  %s3036_s19 = smov %s2286_s20 }
 0x632   : > { %s3037_s20 = smov %s2290_s21  ;;  %s3038_s21 = smov %s2614_s30 }
 0x633   : > { %s3039_s22 = smov %s2298_s23  ;;  %s3040_s23 = smov %s3042_s8 }
 0x634   :  { %43 = sbr.rel (!%p41_p1) target bundleno = 41 (0x29), region = 156 }
 0x63b   :  { %1388 = vsyncpa [#allocation7], 1 }
 0x63c   :  { %1390 = vsyncpa [#allocation7 + $0x1], 1 }
 0x63d   :  { %1391 = vsyncpa [#allocation10], 1 }
 0x63e   :  { %1393 = vsyncpa [#allocation10 + $0x1], 1 }
 0x63f   :  { %1394 = vsyncpa [#allocation13], 1 }
 0x640   :  { %1395 = vsyncpa [#allocation16], 1 }
 0x641   :  { %1396 = vsyncpa [#allocation8], 1 }
 0x642   :  { %1398 = vsyncpa [#allocation8 + $0x1], 1 }

</bundles_post_ra>
